<compile_context>
chip_gen: v6e
topology: v6e:2x2x1
jax: 0.10.0
libtpu: 0.0.40
codegen_flags: <defaults>
</compile_context>

<pallas_src>
import functools

import jax
import jax.numpy as jnp
from jax import lax
from jax.experimental import pallas as pl
from jax.experimental.pallas import tpu as pltpu


# ----------------------------------------------------------------------------
# Pallas kernels
# ----------------------------------------------------------------------------
def _conv_pool_kernel(p_ref, w_ref, b_ref, o_ref, *, pp_pad):
    # p_ref: (1, 4*pp_pad, K) bf16  im2col patches; 4 row-blocks = the four
    #                               (u, v) positions of each 2x2 pool window.
    # w_ref: (K, Cout)        bf16  HWIO conv weight flattened to 2D.
    # b_ref: (1, Cout)        f32
    # o_ref: (1, pp_pad, Cout) bf16 pooled output (first Hp*Wp rows valid).
    acc = jnp.dot(p_ref[0], w_ref[...], preferred_element_type=jnp.float32)
    # Fused MaxPool2d(2): elementwise max over the four (u, v) row-blocks
    # (8-aligned sublane slices thanks to pp_pad % 8 == 0).
    pooled = jnp.maximum(
        jnp.maximum(acc[0 * pp_pad:1 * pp_pad], acc[1 * pp_pad:2 * pp_pad]),
        jnp.maximum(acc[2 * pp_pad:3 * pp_pad], acc[3 * pp_pad:4 * pp_pad]))
    # Bias + ReLU AFTER the pool (commute: max_i relu(x_i + b) = relu(max_i x_i + b))
    # -> epilogue touches 1/4 of the rows.
    out = jnp.maximum(pooled + b_ref[...], 0.0)
    o_ref[0] = out.astype(o_ref.dtype)


def _conv_pool(patches, w2d, b, *, pp_pad):
    """patches: (N, 4*pp_pad, K) bf16; w2d: (K, Cout); b: (Cout,) -> (N, pp_pad, Cout) bf16."""
    N, P4, K = patches.shape
    Cout = w2d.shape[1]
    kernel = functools.partial(_conv_pool_kernel, pp_pad=pp_pad)
    return pl.pallas_call(
        kernel,
        out_shape=jax.ShapeDtypeStruct((N, pp_pad, Cout), jnp.bfloat16),
        grid_spec=pltpu.PrefetchScalarGridSpec(
            num_scalar_prefetch=0,
            grid=(N,),
            in_specs=[
                pl.BlockSpec((1, P4, K), lambda n: (n, 0, 0)),
                pl.BlockSpec((K, Cout), lambda n: (0, 0)),     # VMEM-resident
                pl.BlockSpec((1, Cout), lambda n: (0, 0)),     # across batch
            ],
            out_specs=pl.BlockSpec((1, pp_pad, Cout), lambda n: (n, 0, 0)),
        ),
        compiler_params=pltpu.CompilerParams(
            dimension_semantics=("parallel",)),   # v7x: batch across 2 TCs
    )(patches,
      w2d.astype(jnp.bfloat16),
      b.reshape(1, Cout).astype(jnp.float32))


def _mlp_kernel(x_ref, w1_ref, b1_ref, w2_ref, b2_ref, w3_ref, b3_ref, o_ref):
    # Fused dense head: Linear(F,64)+ReLU -> Linear(64,32)+ReLU -> Linear(32,5)
    # bf16 MXU inputs, f32 accumulate / bias / ReLU.
    h = jnp.dot(x_ref[...], w1_ref[...],
                preferred_element_type=jnp.float32) + b1_ref[...]
    h = jnp.maximum(h, 0.0)
    h = jnp.dot(h.astype(jnp.bfloat16), w2_ref[...],
                preferred_element_type=jnp.float32) + b2_ref[...]
    h = jnp.maximum(h, 0.0)
    o = jnp.dot(h.astype(jnp.bfloat16), w3_ref[...],
                preferred_element_type=jnp.float32) + b3_ref[...]
    o_ref[...] = o.astype(o_ref.dtype)


def _mlp_head(x, w1, b1, w2, b2, w3, b3):
    N, F = x.shape
    H1, H2, O = w1.shape[1], w2.shape[1], w3.shape[1]

    def full(shape):
        return pl.BlockSpec(shape, lambda i: (0,) * len(shape))

    return pl.pallas_call(
        _mlp_kernel,
        out_shape=jax.ShapeDtypeStruct((N, O), jnp.float32),
        grid_spec=pltpu.PrefetchScalarGridSpec(
            num_scalar_prefetch=0,
            grid=(1,),
            in_specs=[full((N, F)),
                      full((F, H1)), full((1, H1)),
                      full((H1, H2)), full((1, H2)),
                      full((H2, O)), full((1, O))],
            out_specs=full((N, O)),
        ),
        compiler_params=pltpu.CompilerParams(
            dimension_semantics=("arbitrary",)),
    )(x.astype(jnp.bfloat16),
      w1.astype(jnp.bfloat16), b1.reshape(1, H1).astype(jnp.float32),
      w2.astype(jnp.bfloat16), b2.reshape(1, H2).astype(jnp.float32),
      w3.astype(jnp.bfloat16), b3.reshape(1, O).astype(jnp.float32))


# ----------------------------------------------------------------------------
# JAX glue (layout only: pool-grouped im2col slicing, padding, reshapes)
# ----------------------------------------------------------------------------
def _pooled_im2col(x, kh=3, kw=3):
    # x: (N, H, W, C) bf16 -> patches (N, 4*pp_pad, kh*kw*C), grouped by pool
    # position (u, v); K ordering (dy, dx, c) matches HWIO weight flattening.
    N, H, W, C = x.shape
    Ho, Wo = H - kh + 1, W - kw + 1
    Hp, Wp = Ho // 2, Wo // 2            # MaxPool2d(2), floor mode
    pp = Hp * Wp
    pp_pad = ((pp + 7) // 8) * 8         # sublane-align pooled row count
    K = kh * kw * C
    blocks = []
    for u in range(2):
        for v in range(2):
            taps = [x[:, u + dy:u + dy + 2 * Hp:2,
                         v + dx:v + dx + 2 * Wp:2, :]
                    for dy in range(kh) for dx in range(kw)]
            blocks.append(jnp.concatenate(taps, axis=-1).reshape(N, 1, pp, K))
    patches = jnp.concatenate(blocks, axis=1)               # (N, 4, pp, K)
    if pp_pad != pp:
        patches = jnp.pad(patches, ((0, 0), (0, 0), (0, pp_pad - pp), (0, 0)))
    return patches.reshape(N, 4 * pp_pad, K), Hp, Wp, pp, pp_pad


def _conv3x3_relu_pool(x, w, b):
    # x: (N,H,W,Cin) bf16, w: (3,3,Cin,Cout) HWIO, b: (Cout,)
    patches, Hp, Wp, pp, pp_pad = _pooled_im2col(x)
    y = _conv_pool(patches, w.reshape(-1, w.shape[-1]), b, pp_pad=pp_pad)
    return y[:, :pp, :].reshape(x.shape[0], Hp, Wp, w.shape[-1])


def _maxpool2(x):
    # Reference-only pool: MaxPool2d(2), stride 2, floor mode.
    N, H, W, C = x.shape
    Hp, Wp = H // 2, W // 2
    x = x[:, :2 * Hp, :2 * Wp, :].reshape(N, Hp, 2, Wp, 2, C)
    return jnp.max(x, axis=(2, 4))


# ----------------------------------------------------------------------------
# Model
# ----------------------------------------------------------------------------
def _calculate_output_size(W, H):
    W = (W - 3 + 2 * 0) // 1 + 1
    H = (H - 3 + 2 * 0) // 1 + 1
    W, H = W // 2, H // 2
    W = W - 3 + 1
    H = H - 3 + 1
    W, H = W // 2, H // 2
    W = W - 3 + 1
    H = H - 3 + 1
    W, H = W // 2, H // 2
    return int(W * H * 256)


def init_params(key, W, H):
    params = {"conv": [], "dense": []}
    k = key
    for cin, cout in [(2, 64), (64, 128), (128, 256)]:
        k, kw_, kb_ = jax.random.split(k, 3)
        wgt = jax.random.normal(kw_, (3, 3, cin, cout), jnp.float32)
        wgt = wgt * jnp.sqrt(2.0 / (9.0 * cin))
        bias = 0.01 * jax.random.normal(kb_, (cout,), jnp.float32)
        params["conv"].append((wgt, bias))
    feat = _calculate_output_size(W, H)
    for fin, fout in [(feat, 64), (64, 32), (32, 5)]:
        k, kw_, kb_ = jax.random.split(k, 3)
        wgt = jax.random.normal(kw_, (fin, fout), jnp.float32)
        wgt = wgt * jnp.sqrt(2.0 / fin)
        bias = 0.01 * jax.random.normal(kb_, (fout,), jnp.float32)
        params["dense"].append((wgt, bias))
    return params


def cnn_min_forward(params, x_nchw):
    # NCHW (PyTorch) -> NHWC for the kernels; bf16 once up-front so the
    # inflated im2col patches / intermediate activations move at half width.
    x = jnp.transpose(x_nchw, (0, 2, 3, 1)).astype(jnp.bfloat16)
    for w, b in params["conv"]:
        # Conv2d(3x3, valid) + ReLU + MaxPool2d(2): one Pallas GEMM kernel.
        x = _conv3x3_relu_pool(x, w, b)
        # nn.Dropout(p=0.2): identity at inference time.
    N, Hf, Wf, Cf = x.shape
    x_flat = x.reshape(N, Hf * Wf * Cf)          # NHWC flatten, no transpose
    (w1, b1), (w2, b2), (w3, b3) = params["dense"]
    # Fold the PyTorch NCHW-order Flatten into w1: permute its rows (weight
    # side, cheap & one-shot) so the NHWC-flattened activation matches.
    H1 = w1.shape[1]
    w1_nhwc = (w1.reshape(Cf, Hf, Wf, H1)
                 .transpose(1, 2, 0, 3)
                 .reshape(Hf * Wf * Cf, H1))
    return _mlp_head(x_flat, w1_nhwc, b1, w2, b2, w3, b3)


def cnn_min_reference(params, x_nchw):
    # Pure-JAX f32 reference mirroring the PyTorch module.
    x = jnp.transpose(x_nchw, (0, 2, 3, 1)).astype(jnp.float32)
    for w, b in params["conv"]:
        x = lax.conv_general_dilated(
            x, w, window_strides=(1, 1), padding="VALID",
            dimension_numbers=("NHWC", "HWIO", "NHWC"))
        x = jnp.maximum(x + b, 0.0)
        x = _maxpool2(x)
    x = jnp.transpose(x, (0, 3, 1, 2)).reshape(x.shape[0], -1)   # NCHW flatten
    for i, (w, b) in enumerate(params["dense"]):
        x = x @ w + b
        if i < 2:
            x = jnp.maximum(x, 0.0)
    return x


if __name__ == "__main__":
    N, Cin, Hsz, Wsz = 2, 2, 28, 28   # conv stack output 1x1x256 -> feat=256
    key = jax.random.PRNGKey(0)
    kx, kp = jax.random.split(key)
    x = jax.random.normal(kx, (N, Cin, Hsz, Wsz), jnp.float32)  # NCHW input
    params = init_params(kp, Wsz, Hsz)

    out = jax.jit(cnn_min_forward)(params, x)
    out = jax.block_until_ready(out)

    ref = cnn_min_reference(params, x)
    assert out.shape == (N, 5), out.shape
    # bf16 MXU inputs / bf16 inter-layer activations -> slightly looser
    # tolerance than a pure-f32 pipeline.
    assert bool(jnp.allclose(out, ref, rtol=3e-2, atol=3e-2)), (out, ref)
    print("KERNEL_OK")
</pallas_src>

<mosaic_0001>
module attributes {stable_mosaic.version = 11 : i64} {
  func.func @_conv_pool_kernel(%arg0: i32, %arg1: memref<1x704x18xbf16, #tpu.memory_space<vmem>>, %arg2: memref<18x64xbf16, #tpu.memory_space<vmem>>, %arg3: memref<1x64xf32, #tpu.memory_space<vmem>>, %arg4: memref<1x176x64xbf16, #tpu.memory_space<vmem>>) attributes {dimension_semantics = [#tpu.dimension_semantics<parallel>], iteration_bounds = array<i64: 2>, scalar_prefetch = 0 : i64, scratch_operands = 0 : i64, tpu.core_type = #tpu.core_type<tc>, window_params = [{transform_indices = @transform_0, window_bounds = array<i64: 1, 704, 18>}, {pipeline_mode = #tpu.pipeline_mode<synchronous>, transform_indices = @transform_1, window_bounds = array<i64: 18, 64>}, {pipeline_mode = #tpu.pipeline_mode<synchronous>, transform_indices = @transform_2, window_bounds = array<i64: 1, 64>}, {transform_indices = @transform_3, window_bounds = array<i64: 1, 176, 64>}]} {
    %c0 = arith.constant 0 : index
    %c0_0 = arith.constant 0 : index
    %c0_1 = arith.constant 0 : index
    %0 = vector.load %arg1[%c0, %c0_0, %c0_1] : memref<1x704x18xbf16, #tpu.memory_space<vmem>>, vector<1x704x18xbf16>
    %1 = vector.shape_cast %0 : vector<1x704x18xbf16> to vector<704x18xbf16>
    %c0_2 = arith.constant 0 : index
    %c0_3 = arith.constant 0 : index
    %2 = vector.load %arg2[%c0_2, %c0_3] : memref<18x64xbf16, #tpu.memory_space<vmem>>, vector<18x64xbf16>
    %cst = arith.constant dense<0.000000e+00> : vector<704x64xf32>
    %3 = tpu.matmul %1, %2, %cst {dimension_numbers = #tpu.dot_dimension_numbers<[1], [0], [0], [1], [0, 0, 1, 1], [], []>} : vector<704x18xbf16>, vector<18x64xbf16>, vector<704x64xf32> -> vector<704x64xf32>
    %4 = vector.extract_strided_slice %3 {offsets = [0, 0], sizes = [176, 64], strides = [1, 1]} : vector<704x64xf32> to vector<176x64xf32>
    %5 = vector.extract_strided_slice %3 {offsets = [176, 0], sizes = [176, 64], strides = [1, 1]} : vector<704x64xf32> to vector<176x64xf32>
    %6 = arith.maximumf %4, %5 : vector<176x64xf32>
    %7 = vector.extract_strided_slice %3 {offsets = [352, 0], sizes = [176, 64], strides = [1, 1]} : vector<704x64xf32> to vector<176x64xf32>
    %8 = vector.extract_strided_slice %3 {offsets = [528, 0], sizes = [176, 64], strides = [1, 1]} : vector<704x64xf32> to vector<176x64xf32>
    %9 = arith.maximumf %7, %8 : vector<176x64xf32>
    %10 = arith.maximumf %6, %9 : vector<176x64xf32>
    %c0_4 = arith.constant 0 : index
    %c0_5 = arith.constant 0 : index
    %11 = vector.load %arg3[%c0_4, %c0_5] : memref<1x64xf32, #tpu.memory_space<vmem>>, vector<1x64xf32>
    %12 = vector.broadcast %11 : vector<1x64xf32> to vector<176x64xf32>
    %13 = arith.addf %10, %12 : vector<176x64xf32>
    %cst_6 = arith.constant 0.000000e+00 : f32
    %14 = vector.broadcast %cst_6 : f32 to vector<176x64xf32>
    %15 = arith.maximumf %13, %14 : vector<176x64xf32>
    %16 = arith.truncf %15 : vector<176x64xf32> to vector<176x64xbf16>
    %c0_7 = arith.constant 0 : index
    %c0_8 = arith.constant 0 : index
    %c0_9 = arith.constant 0 : index
    %17 = vector.load %arg4[%c0_7, %c0_8, %c0_9] : memref<1x176x64xbf16, #tpu.memory_space<vmem>>, vector<1x176x64xbf16>
    %18 = vector.shape_cast %17 : vector<1x176x64xbf16> to vector<176x64xbf16>
    %19 = vector.shape_cast %16 : vector<176x64xbf16> to vector<1x176x64xbf16>
    tpu.vector_store %arg4[%c0_7, %c0_8, %c0_9], %19 {strides = array<i32>} : memref<1x176x64xbf16, #tpu.memory_space<vmem>>, vector<1x176x64xbf16>,
    return
  }
  func.func @transform_0(%arg0: i32) -> (i32, i32, i32) {
    %c0_i32 = arith.constant 0 : i32
    %c0_i32_0 = arith.constant 0 : i32
    %c0_i32_1 = arith.constant 0 : i32
    return %arg0, %c0_i32, %c0_i32_0 : i32, i32, i32
  }
  func.func @transform_1(%arg0: i32) -> (i32, i32) {
    %c0_i32 = arith.constant 0 : i32
    %c0_i32_0 = arith.constant 0 : i32
    %c0_i32_1 = arith.constant 0 : i32
    return %c0_i32, %c0_i32_0 : i32, i32
  }
  func.func @transform_2(%arg0: i32) -> (i32, i32) {
    %c0_i32 = arith.constant 0 : i32
    %c0_i32_0 = arith.constant 0 : i32
    %c0_i32_1 = arith.constant 0 : i32
    return %c0_i32, %c0_i32_0 : i32, i32
  }
  func.func @transform_3(%arg0: i32) -> (i32, i32, i32) {
    %c0_i32 = arith.constant 0 : i32
    %c0_i32_0 = arith.constant 0 : i32
    %c0_i32_1 = arith.constant 0 : i32
    return %arg0, %c0_i32, %c0_i32_0 : i32, i32, i32
  }
}

module attributes {stable_mosaic.version = 11 : i64} {
  func.func @_conv_pool_kernel(%arg0: i32, %arg1: memref<1x128x576xbf16, #tpu.memory_space<vmem>>, %arg2: memref<576x128xbf16, #tpu.memory_space<vmem>>, %arg3: memref<1x128xf32, #tpu.memory_space<vmem>>, %arg4: memref<1x32x128xbf16, #tpu.memory_space<vmem>>) attributes {dimension_semantics = [#tpu.dimension_semantics<parallel>], iteration_bounds = array<i64: 2>, scalar_prefetch = 0 : i64, scratch_operands = 0 : i64, tpu.core_type = #tpu.core_type<tc>, window_params = [{transform_indices = @transform_0, window_bounds = array<i64: 1, 128, 576>}, {pipeline_mode = #tpu.pipeline_mode<synchronous>, transform_indices = @transform_1, window_bounds = array<i64: 576, 128>}, {pipeline_mode = #tpu.pipeline_mode<synchronous>, transform_indices = @transform_2, window_bounds = array<i64: 1, 128>}, {transform_indices = @transform_3, window_bounds = array<i64: 1, 32, 128>}]} {
    %c0 = arith.constant 0 : index
    %c0_0 = arith.constant 0 : index
    %c0_1 = arith.constant 0 : index
    %0 = vector.load %arg1[%c0, %c0_0, %c0_1] : memref<1x128x576xbf16, #tpu.memory_space<vmem>>, vector<1x128x576xbf16>
    %1 = vector.shape_cast %0 : vector<1x128x576xbf16> to vector<128x576xbf16>
    %c0_2 = arith.constant 0 : index
    %c0_3 = arith.constant 0 : index
    %2 = vector.load %arg2[%c0_2, %c0_3] : memref<576x128xbf16, #tpu.memory_space<vmem>>, vector<576x128xbf16>
    %cst = arith.constant dense<0.000000e+00> : vector<128x128xf32>
    %3 = tpu.matmul %1, %2, %cst {dimension_numbers = #tpu.dot_dimension_numbers<[1], [0], [0], [1], [0, 0, 1, 1], [], []>} : vector<128x576xbf16>, vector<576x128xbf16>, vector<128x128xf32> -> vector<128x128xf32>
    %4 = vector.extract_strided_slice %3 {offsets = [0, 0], sizes = [32, 128], strides = [1, 1]} : vector<128x128xf32> to vector<32x128xf32>
    %5 = vector.extract_strided_slice %3 {offsets = [32, 0], sizes = [32, 128], strides = [1, 1]} : vector<128x128xf32> to vector<32x128xf32>
    %6 = arith.maximumf %4, %5 : vector<32x128xf32>
    %7 = vector.extract_strided_slice %3 {offsets = [64, 0], sizes = [32, 128], strides = [1, 1]} : vector<128x128xf32> to vector<32x128xf32>
    %8 = vector.extract_strided_slice %3 {offsets = [96, 0], sizes = [32, 128], strides = [1, 1]} : vector<128x128xf32> to vector<32x128xf32>
    %9 = arith.maximumf %7, %8 : vector<32x128xf32>
    %10 = arith.maximumf %6, %9 : vector<32x128xf32>
    %c0_4 = arith.constant 0 : index
    %c0_5 = arith.constant 0 : index
    %11 = vector.load %arg3[%c0_4, %c0_5] : memref<1x128xf32, #tpu.memory_space<vmem>>, vector<1x128xf32>
    %12 = vector.broadcast %11 : vector<1x128xf32> to vector<32x128xf32>
    %13 = arith.addf %10, %12 : vector<32x128xf32>
    %cst_6 = arith.constant 0.000000e+00 : f32
    %14 = vector.broadcast %cst_6 : f32 to vector<32x128xf32>
    %15 = arith.maximumf %13, %14 : vector<32x128xf32>
    %16 = arith.truncf %15 : vector<32x128xf32> to vector<32x128xbf16>
    %c0_7 = arith.constant 0 : index
    %c0_8 = arith.constant 0 : index
    %c0_9 = arith.constant 0 : index
    %17 = vector.load %arg4[%c0_7, %c0_8, %c0_9] : memref<1x32x128xbf16, #tpu.memory_space<vmem>>, vector<1x32x128xbf16>
    %18 = vector.shape_cast %17 : vector<1x32x128xbf16> to vector<32x128xbf16>
    %19 = vector.shape_cast %16 : vector<32x128xbf16> to vector<1x32x128xbf16>
    tpu.vector_store %arg4[%c0_7, %c0_8, %c0_9], %19 {strides = array<i32>} : memref<1x32x128xbf16, #tpu.memory_space<vmem>>, vector<1x32x128xbf16>,
    return
  }
  func.func @transform_0(%arg0: i32) -> (i32, i32, i32) {
    %c0_i32 = arith.constant 0 : i32
    %c0_i32_0 = arith.constant 0 : i32
    %c0_i32_1 = arith.constant 0 : i32
    return %arg0, %c0_i32, %c0_i32_0 : i32, i32, i32
  }
  func.func @transform_1(%arg0: i32) -> (i32, i32) {
    %c0_i32 = arith.constant 0 : i32
    %c0_i32_0 = arith.constant 0 : i32
    %c0_i32_1 = arith.constant 0 : i32
    return %c0_i32, %c0_i32_0 : i32, i32
  }
  func.func @transform_2(%arg0: i32) -> (i32, i32) {
    %c0_i32 = arith.constant 0 : i32
    %c0_i32_0 = arith.constant 0 : i32
    %c0_i32_1 = arith.constant 0 : i32
    return %c0_i32, %c0_i32_0 : i32, i32
  }
  func.func @transform_3(%arg0: i32) -> (i32, i32, i32) {
    %c0_i32 = arith.constant 0 : i32
    %c0_i32_0 = arith.constant 0 : i32
    %c0_i32_1 = arith.constant 0 : i32
    return %arg0, %c0_i32, %c0_i32_0 : i32, i32, i32
  }
}

module attributes {stable_mosaic.version = 11 : i64} {
  func.func @_conv_pool_kernel(%arg0: i32, %arg1: memref<1x32x1152xbf16, #tpu.memory_space<vmem>>, %arg2: memref<1152x256xbf16, #tpu.memory_space<vmem>>, %arg3: memref<1x256xf32, #tpu.memory_space<vmem>>, %arg4: memref<1x8x256xbf16, #tpu.memory_space<vmem>>) attributes {dimension_semantics = [#tpu.dimension_semantics<parallel>], iteration_bounds = array<i64: 2>, scalar_prefetch = 0 : i64, scratch_operands = 0 : i64, tpu.core_type = #tpu.core_type<tc>, window_params = [{transform_indices = @transform_0, window_bounds = array<i64: 1, 32, 1152>}, {pipeline_mode = #tpu.pipeline_mode<synchronous>, transform_indices = @transform_1, window_bounds = array<i64: 1152, 256>}, {pipeline_mode = #tpu.pipeline_mode<synchronous>, transform_indices = @transform_2, window_bounds = array<i64: 1, 256>}, {transform_indices = @transform_3, window_bounds = array<i64: 1, 8, 256>}]} {
    %c0 = arith.constant 0 : index
    %c0_0 = arith.constant 0 : index
    %c0_1 = arith.constant 0 : index
    %0 = vector.load %arg1[%c0, %c0_0, %c0_1] : memref<1x32x1152xbf16, #tpu.memory_space<vmem>>, vector<1x32x1152xbf16>
    %1 = vector.shape_cast %0 : vector<1x32x1152xbf16> to vector<32x1152xbf16>
    %c0_2 = arith.constant 0 : index
    %c0_3 = arith.constant 0 : index
    %2 = vector.load %arg2[%c0_2, %c0_3] : memref<1152x256xbf16, #tpu.memory_space<vmem>>, vector<1152x256xbf16>
    %cst = arith.constant dense<0.000000e+00> : vector<32x256xf32>
    %3 = tpu.matmul %1, %2, %cst {dimension_numbers = #tpu.dot_dimension_numbers<[1], [0], [0], [1], [0, 0, 1, 1], [], []>} : vector<32x1152xbf16>, vector<1152x256xbf16>, vector<32x256xf32> -> vector<32x256xf32>
    %4 = vector.extract_strided_slice %3 {offsets = [0, 0], sizes = [8, 256], strides = [1, 1]} : vector<32x256xf32> to vector<8x256xf32>
    %5 = vector.extract_strided_slice %3 {offsets = [8, 0], sizes = [8, 256], strides = [1, 1]} : vector<32x256xf32> to vector<8x256xf32>
    %6 = arith.maximumf %4, %5 : vector<8x256xf32>
    %7 = vector.extract_strided_slice %3 {offsets = [16, 0], sizes = [8, 256], strides = [1, 1]} : vector<32x256xf32> to vector<8x256xf32>
    %8 = vector.extract_strided_slice %3 {offsets = [24, 0], sizes = [8, 256], strides = [1, 1]} : vector<32x256xf32> to vector<8x256xf32>
    %9 = arith.maximumf %7, %8 : vector<8x256xf32>
    %10 = arith.maximumf %6, %9 : vector<8x256xf32>
    %c0_4 = arith.constant 0 : index
    %c0_5 = arith.constant 0 : index
    %11 = vector.load %arg3[%c0_4, %c0_5] : memref<1x256xf32, #tpu.memory_space<vmem>>, vector<1x256xf32>
    %12 = vector.broadcast %11 : vector<1x256xf32> to vector<8x256xf32>
    %13 = arith.addf %10, %12 : vector<8x256xf32>
    %cst_6 = arith.constant 0.000000e+00 : f32
    %14 = vector.broadcast %cst_6 : f32 to vector<8x256xf32>
    %15 = arith.maximumf %13, %14 : vector<8x256xf32>
    %16 = arith.truncf %15 : vector<8x256xf32> to vector<8x256xbf16>
    %c0_7 = arith.constant 0 : index
    %c0_8 = arith.constant 0 : index
    %c0_9 = arith.constant 0 : index
    %17 = vector.load %arg4[%c0_7, %c0_8, %c0_9] : memref<1x8x256xbf16, #tpu.memory_space<vmem>>, vector<1x8x256xbf16>
    %18 = vector.shape_cast %17 : vector<1x8x256xbf16> to vector<8x256xbf16>
    %19 = vector.shape_cast %16 : vector<8x256xbf16> to vector<1x8x256xbf16>
    tpu.vector_store %arg4[%c0_7, %c0_8, %c0_9], %19 {strides = array<i32>} : memref<1x8x256xbf16, #tpu.memory_space<vmem>>, vector<1x8x256xbf16>,
    return
  }
  func.func @transform_0(%arg0: i32) -> (i32, i32, i32) {
    %c0_i32 = arith.constant 0 : i32
    %c0_i32_0 = arith.constant 0 : i32
    %c0_i32_1 = arith.constant 0 : i32
    return %arg0, %c0_i32, %c0_i32_0 : i32, i32, i32
  }
  func.func @transform_1(%arg0: i32) -> (i32, i32) {
    %c0_i32 = arith.constant 0 : i32
    %c0_i32_0 = arith.constant 0 : i32
    %c0_i32_1 = arith.constant 0 : i32
    return %c0_i32, %c0_i32_0 : i32, i32
  }
  func.func @transform_2(%arg0: i32) -> (i32, i32) {
    %c0_i32 = arith.constant 0 : i32
    %c0_i32_0 = arith.constant 0 : i32
    %c0_i32_1 = arith.constant 0 : i32
    return %c0_i32, %c0_i32_0 : i32, i32
  }
  func.func @transform_3(%arg0: i32) -> (i32, i32, i32) {
    %c0_i32 = arith.constant 0 : i32
    %c0_i32_0 = arith.constant 0 : i32
    %c0_i32_1 = arith.constant 0 : i32
    return %arg0, %c0_i32, %c0_i32_0 : i32, i32, i32
  }
}

module attributes {stable_mosaic.version = 11 : i64} {
  func.func @_mlp_kernel(%arg0: i32, %arg1: memref<2x256xbf16, #tpu.memory_space<vmem>>, %arg2: memref<256x64xbf16, #tpu.memory_space<vmem>>, %arg3: memref<1x64xf32, #tpu.memory_space<vmem>>, %arg4: memref<64x32xbf16, #tpu.memory_space<vmem>>, %arg5: memref<1x32xf32, #tpu.memory_space<vmem>>, %arg6: memref<32x5xbf16, #tpu.memory_space<vmem>>, %arg7: memref<1x5xf32, #tpu.memory_space<vmem>>, %arg8: memref<2x5xf32, #tpu.memory_space<vmem>>) attributes {dimension_semantics = [#tpu.dimension_semantics<arbitrary>], iteration_bounds = array<i64: 1>, scalar_prefetch = 0 : i64, scratch_operands = 0 : i64, tpu.core_type = #tpu.core_type<tc>, window_params = [{pipeline_mode = #tpu.pipeline_mode<synchronous>, transform_indices = @transform_0, window_bounds = array<i64: 2, 256>}, {pipeline_mode = #tpu.pipeline_mode<synchronous>, transform_indices = @transform_1, window_bounds = array<i64: 256, 64>}, {pipeline_mode = #tpu.pipeline_mode<synchronous>, transform_indices = @transform_2, window_bounds = array<i64: 1, 64>}, {pipeline_mode = #tpu.pipeline_mode<synchronous>, transform_indices = @transform_3, window_bounds = array<i64: 64, 32>}, {pipeline_mode = #tpu.pipeline_mode<synchronous>, transform_indices = @transform_4, window_bounds = array<i64: 1, 32>}, {pipeline_mode = #tpu.pipeline_mode<synchronous>, transform_indices = @transform_5, window_bounds = array<i64: 32, 5>}, {pipeline_mode = #tpu.pipeline_mode<synchronous>, transform_indices = @transform_6, window_bounds = array<i64: 1, 5>}, {pipeline_mode = #tpu.pipeline_mode<synchronous>, transform_indices = @transform_7, window_bounds = array<i64: 2, 5>}]} {
    %c0 = arith.constant 0 : index
    %c0_0 = arith.constant 0 : index
    %0 = vector.load %arg1[%c0, %c0_0] : memref<2x256xbf16, #tpu.memory_space<vmem>>, vector<2x256xbf16>
    %c0_1 = arith.constant 0 : index
    %c0_2 = arith.constant 0 : index
    %1 = vector.load %arg2[%c0_1, %c0_2] : memref<256x64xbf16, #tpu.memory_space<vmem>>, vector<256x64xbf16>
    %cst = arith.constant dense<0.000000e+00> : vector<2x64xf32>
    %2 = tpu.matmul %0, %1, %cst {dimension_numbers = #tpu.dot_dimension_numbers<[1], [0], [0], [1], [0, 0, 1, 1], [], []>} : vector<2x256xbf16>, vector<256x64xbf16>, vector<2x64xf32> -> vector<2x64xf32>
    %c0_3 = arith.constant 0 : index
    %c0_4 = arith.constant 0 : index
    %3 = vector.load %arg3[%c0_3, %c0_4] : memref<1x64xf32, #tpu.memory_space<vmem>>, vector<1x64xf32>
    %4 = vector.broadcast %3 : vector<1x64xf32> to vector<2x64xf32>
    %5 = arith.addf %2, %4 : vector<2x64xf32>
    %cst_5 = arith.constant 0.000000e+00 : f32
    %6 = vector.broadcast %cst_5 : f32 to vector<2x64xf32>
    %7 = arith.maximumf %5, %6 : vector<2x64xf32>
    %8 = arith.truncf %7 : vector<2x64xf32> to vector<2x64xbf16>
    %c0_6 = arith.constant 0 : index
    %c0_7 = arith.constant 0 : index
    %9 = vector.load %arg4[%c0_6, %c0_7] : memref<64x32xbf16, #tpu.memory_space<vmem>>, vector<64x32xbf16>
    %cst_8 = arith.constant dense<0.000000e+00> : vector<2x32xf32>
    %10 = tpu.matmul %8, %9, %cst_8 {dimension_numbers = #tpu.dot_dimension_numbers<[1], [0], [0], [1], [0, 0, 1, 1], [], []>} : vector<2x64xbf16>, vector<64x32xbf16>, vector<2x32xf32> -> vector<2x32xf32>
    %c0_9 = arith.constant 0 : index
    %c0_10 = arith.constant 0 : index
    %11 = vector.load %arg5[%c0_9, %c0_10] : memref<1x32xf32, #tpu.memory_space<vmem>>, vector<1x32xf32>
    %12 = vector.broadcast %11 : vector<1x32xf32> to vector<2x32xf32>
    %13 = arith.addf %10, %12 : vector<2x32xf32>
    %cst_11 = arith.constant 0.000000e+00 : f32
    %14 = vector.broadcast %cst_11 : f32 to vector<2x32xf32>
    %15 = arith.maximumf %13, %14 : vector<2x32xf32>
    %16 = arith.truncf %15 : vector<2x32xf32> to vector<2x32xbf16>
    %c0_12 = arith.constant 0 : index
    %c0_13 = arith.constant 0 : index
    %17 = vector.load %arg6[%c0_12, %c0_13] : memref<32x5xbf16, #tpu.memory_space<vmem>>, vector<32x5xbf16>
    %cst_14 = arith.constant dense<0.000000e+00> : vector<2x5xf32>
    %18 = tpu.matmul %16, %17, %cst_14 {dimension_numbers = #tpu.dot_dimension_numbers<[1], [0], [0], [1], [0, 0, 1, 1], [], []>} : vector<2x32xbf16>, vector<32x5xbf16>, vector<2x5xf32> -> vector<2x5xf32>
    %c0_15 = arith.constant 0 : index
    %c0_16 = arith.constant 0 : index
    %19 = vector.load %arg7[%c0_15, %c0_16] : memref<1x5xf32, #tpu.memory_space<vmem>>, vector<1x5xf32>
    %20 = vector.broadcast %19 : vector<1x5xf32> to vector<2x5xf32>
    %21 = arith.addf %18, %20 : vector<2x5xf32>
    %c0_17 = arith.constant 0 : index
    %c0_18 = arith.constant 0 : index
    %22 = vector.load %arg8[%c0_17, %c0_18] : memref<2x5xf32, #tpu.memory_space<vmem>>, vector<2x5xf32>
    tpu.vector_store %arg8[%c0_17, %c0_18], %21 {strides = array<i32>} : memref<2x5xf32, #tpu.memory_space<vmem>>, vector<2x5xf32>,
    return
  }
  func.func @transform_0(%arg0: i32) -> (i32, i32) {
    %c0_i32 = arith.constant 0 : i32
    %c0_i32_0 = arith.constant 0 : i32
    %c0_i32_1 = arith.constant 0 : i32
    return %c0_i32, %c0_i32_0 : i32, i32
  }
  func.func @transform_1(%arg0: i32) -> (i32, i32) {
    %c0_i32 = arith.constant 0 : i32
    %c0_i32_0 = arith.constant 0 : i32
    %c0_i32_1 = arith.constant 0 : i32
    return %c0_i32, %c0_i32_0 : i32, i32
  }
  func.func @transform_2(%arg0: i32) -> (i32, i32) {
    %c0_i32 = arith.constant 0 : i32
    %c0_i32_0 = arith.constant 0 : i32
    %c0_i32_1 = arith.constant 0 : i32
    return %c0_i32, %c0_i32_0 : i32, i32
  }
  func.func @transform_3(%arg0: i32) -> (i32, i32) {
    %c0_i32 = arith.constant 0 : i32
    %c0_i32_0 = arith.constant 0 : i32
    %c0_i32_1 = arith.constant 0 : i32
    return %c0_i32, %c0_i32_0 : i32, i32
  }
  func.func @transform_4(%arg0: i32) -> (i32, i32) {
    %c0_i32 = arith.constant 0 : i32
    %c0_i32_0 = arith.constant 0 : i32
    %c0_i32_1 = arith.constant 0 : i32
    return %c0_i32, %c0_i32_0 : i32, i32
  }
  func.func @transform_5(%arg0: i32) -> (i32, i32) {
    %c0_i32 = arith.constant 0 : i32
    %c0_i32_0 = arith.constant 0 : i32
    %c0_i32_1 = arith.constant 0 : i32
    return %c0_i32, %c0_i32_0 : i32, i32
  }
  func.func @transform_6(%arg0: i32) -> (i32, i32) {
    %c0_i32 = arith.constant 0 : i32
    %c0_i32_0 = arith.constant 0 : i32
    %c0_i32_1 = arith.constant 0 : i32
    return %c0_i32, %c0_i32_0 : i32, i32
  }
  func.func @transform_7(%arg0: i32) -> (i32, i32) {
    %c0_i32 = arith.constant 0 : i32
    %c0_i32_0 = arith.constant 0 : i32
    %c0_i32_1 = arith.constant 0 : i32
    return %c0_i32, %c0_i32_0 : i32, i32
  }
}

</mosaic_0001>

<bundles_post_ra>
// kernel: cnn_min_forward.4
= control target key start
LH: loop header
LB: loop body
LE: loop exit
PB: predicated region body
PF: predicated region fallthrough
CT: control target
= control target key end

     0   :  { %s1669_s12 = smov 0   ;;  %s1973_s0 = inlined_call_operand.vmem [shape: bf16[2,704,18], index: 0, kind: input, shape index: {}]   ;;  %s1974_s1 = inlined_call_operand.vmem [shape: bf16[18,64], index: 1, kind: input, shape index: {}]   ;;  %s1975_s2 = inlined_call_operand.vmem [shape: f32[1,64], index: 2, kind: input, shape index: {}]   ;;  %s1976_s3 = inlined_call_operand.vmem [shape: bf16[2,176,64], index: 3, kind: output, shape index: {}]  }
   0x1 LB: > { %s1297_s13 = sadd.s32 4294967295, %s1647_s12   ;;  %p1301_p0 = scmp.ge.s32.totalorder %s1647_s12, 1  ;;  %s1647_s12 = sphi %s1669_s12, %s13_s12  }
   0x2   : > { %p137_p1 = scmp.lt.s32.totalorder %s1647_s12, 3 }
   0x4   : > { %p138_p2 = pnand %p1301_p0, %p137_p1 }
   0x5   : > { %p161_p3 = scmp.lt.s32.totalorder (!%p138_p2), %s1297_s13, 1 }
   0x6   : > { %141 = sbr.rel (%p138_p2) target bundleno = 311 (0x137), region = 32 }
   0xb   : > { %v1595_v0 = vld [vmem:[%s1974_s1 + $0x8] ss:$0 sps:$4 sm:$0x11]   ;;  %vm625_vm0 = vcmask 1040384   ;;  %v1596_v1 = vld [vmem:[%s1974_s1] sm:$0xff]   ;;  %s1978_s13 = smov (!%p161_p3, %s1297_s13), 1 }
   0xc   : > { %1583 = vmatprep.subr.msk.bf16.mxu0 %vm625_vm0, %v1595_v0  ;;  %1584 = vmatprep.subr.msk.bf16.mxu1 %vm625_vm0, %v1595_v0  ;;  %v627_v2 = vsel %vm625_vm0, %v1595_v0, 0  ;;  %s1585_s18 = smul.u32 352, %s1978_s13  ;;  %vm492_vm1 = vcmask 146432   ;;  %vm1219_vm2 = vcmask 519168  }
   0xd   : > { %1488 = vmatpush3.bf16.msra.mxu0 %v627_v2  ;;  %1581 = vmatpush3.bf16.msra.mxu1 %v627_v2  ;;  %s1586_s24 = smul.u32 88, %s1978_s13 }
   0xe   : > { %1489 = vmatprep.subr.bf16.mxu0 %v1596_v1  ;;  %1580 = vmatprep.subr.bf16.mxu1 %v1596_v1  ;;  %s1689_s21 = scalar_lea.vmem %s1973_s0, %s1585_s18 }
   0xf   : > { %v1597_v3 = vld [vmem:[%s1689_s21] sm:$0xff]   ;;  %v1598_v4 = vld [vmem:[%s1689_s21 + $0xb0] sm:$0xff]   ;;  %v1599_v5 = vld [vmem:[%s1689_s21 + $0x8] sm:$0xff]   ;;  %s1865_s27 = scalar_lea.vmem %s1976_s3, %s1586_s24 }
  0x10   : > { %1491 = vmatprep.mubr.msk.bf16.mxu0 %vm492_vm1, %v1597_v3  ;;  %1535 = vmatprep.mubr.msk.bf16.mxu1 %vm492_vm1, %v1598_v4  ;;  %v1600_v6 = vld [vmem:[%s1689_s21 + $0xb8] sm:$0xff]   ;;  %v1601_v7 = vld [vmem:[%s1689_s21 + $0x10] sm:$0xff]   ;;  %v1602_v8 = vld [vmem:[%s1689_s21 + $0xc0] sm:$0xff]  }
  0x11   : > { %1490 = vmatpush3.bf16.msra.mxu0 %v1596_v1  ;;  %1582 = vmatpush3.bf16.msra.mxu1 %v1596_v1  ;;  %v1603_v9 = vld [vmem:[%s1689_s21 + $0x18] sm:$0xff]   ;;  %v1604_v10 = vld [vmem:[%s1689_s21 + $0xc8] sm:$0xff]   ;;  %v1605_v11 = vld [vmem:[%s1689_s21 + $0x20] sm:$0xff]  }
  0x12   : > { %v1606_v12 = vld [vmem:[%s1689_s21 + $0xd0] sm:$0xff]   ;;  %v1607_v13 = vld [vmem:[%s1689_s21 + $0x28] sm:$0xff]   ;;  %v1608_v14 = vld [vmem:[%s1689_s21 + $0xd8] sm:$0xff]  }
  0x13   : > { %v1609_v15 = vld [vmem:[%s1689_s21 + $0x30] sm:$0xff]   ;;  %v1610_v16 = vld [vmem:[%s1689_s21 + $0xe0] sm:$0xff]   ;;  %v1611_v17 = vld [vmem:[%s1689_s21 + $0x38] sm:$0xff]  }
  0x14   : > { %1492 = vmatmul.mubr.msk.bf16.vlgmr.msra.gmra.mxu0 %vm492_vm1, %v1599_v5  ;;  %1536 = vmatmul.mubr.msk.bf16.vlgmr.msra.gmra.mxu1 %vm492_vm1, %v1600_v6  ;;  %v1612_v18 = vld [vmem:[%s1689_s21 + $0xe8] sm:$0xff]   ;;  %v1613_v19 = vld [vmem:[%s1689_s21 + $0x40] sm:$0xff]   ;;  %v1614_v20 = vld [vmem:[%s1689_s21 + $0xf0] sm:$0xff]  }
  0x15   : > { %1495 = vmatprep.mubr.msk.bf16.mxu0 %vm492_vm1, %v1601_v7  ;;  %1539 = vmatprep.mubr.msk.bf16.mxu1 %vm492_vm1, %v1602_v8  ;;  %v1615_v21 = vld [vmem:[%s1689_s21 + $0x48] sm:$0xff]   ;;  %v1616_v22 = vld [vmem:[%s1689_s21 + $0xf8] sm:$0xff]   ;;  %v1617_v23 = vld [vmem:[%s1689_s21 + $0x50] sm:$0xff]  }
  0x16   : > { %v1618_v24 = vld [vmem:[%s1689_s21 + $0x100] sm:$0xff]   ;;  %v1619_v25 = vld [vmem:[%s1689_s21 + $0x58] sm:$0xff]   ;;  %v1620_v26 = vld [vmem:[%s1689_s21 + $0x108] sm:$0xff]  }
  0x17   : > { %v1621_v27 = vld [vmem:[%s1689_s21 + $0x60] sm:$0xff]   ;;  %v1622_v28 = vld [vmem:[%s1689_s21 + $0x110] sm:$0xff]   ;;  %v1623_v29 = vld [vmem:[%s1689_s21 + $0x68] sm:$0xff]  }
  0x18   : > { %v1624_v30 = vld [vmem:[%s1689_s21 + $0x118] sm:$0xff]   ;;  %v1625_v31 = vld [vmem:[%s1689_s21 + $0x70] sm:$0xff]   ;;  %v1626_v32 = vld [vmem:[%s1689_s21 + $0x120] sm:$0xff]  }
  0x19   : > { %v1627_v33 = vld [vmem:[%s1689_s21 + $0x78] sm:$0xff]   ;;  %v1628_v34 = vld [vmem:[%s1689_s21 + $0x128] sm:$0xff]   ;;  %v1629_v35 = vld [vmem:[%s1689_s21 + $0x80] sm:$0xff]  }
  0x1a   : > { %v1630_v36 = vld [vmem:[%s1689_s21 + $0x130] sm:$0xff]   ;;  %v1631_v37 = vld [vmem:[%s1689_s21 + $0x88] sm:$0xff]   ;;  %v1632_v38 = vld [vmem:[%s1689_s21 + $0x138] sm:$0xff]  }
  0x1b   : > { %v1633_v39 = vld [vmem:[%s1689_s21 + $0x90] sm:$0xff]   ;;  %v1634_v40 = vld [vmem:[%s1689_s21 + $0x140] sm:$0xff]   ;;  %v1635_v41 = vld [vmem:[%s1689_s21 + $0x98] sm:$0xff]  }
  0x1c   : > { %1496 = vmatmul.mubr.msk.bf16.gmra.mxu0 %vm492_vm1, %v1603_v9  ;;  %1540 = vmatmul.mubr.msk.bf16.gmra.mxu1 %vm492_vm1, %v1604_v10  ;;  %v1636_v42 = vld [vmem:[%s1689_s21 + $0x148] sm:$0xff]   ;;  %v1637_v43 = vld [vmem:[%s1689_s21 + $0xa0] sm:$0xff]   ;;  %v1638_v44 = vld [vmem:[%s1689_s21 + $0x150] sm:$0xff]  }
  0x1d   : > { %1499 = vmatprep.mubr.msk.bf16.mxu0 %vm492_vm1, %v1605_v11  ;;  %1543 = vmatprep.mubr.msk.bf16.mxu1 %vm492_vm1, %v1606_v12  ;;  %v1639_v45 = vld [vmem:[%s1689_s21 + $0xa8] sm:$0xff]   ;;  %v1640_v46 = vld [vmem:[%s1689_s21 + $0x158] sm:$0xff]  }
  0x24   : > { %1500 = vmatmul.mubr.msk.bf16.gmra.mxu0 %vm492_vm1, %v1607_v13  ;;  %1544 = vmatmul.mubr.msk.bf16.gmra.mxu1 %vm492_vm1, %v1608_v14 }
  0x25   : > { %1503 = vmatprep.mubr.msk.bf16.mxu0 %vm492_vm1, %v1609_v15  ;;  %1547 = vmatprep.mubr.msk.bf16.mxu1 %vm492_vm1, %v1610_v16 }
  0x2c   : > { %1504 = vmatmul.mubr.msk.bf16.gmra.mxu0 %vm492_vm1, %v1611_v17  ;;  %1548 = vmatmul.mubr.msk.bf16.gmra.mxu1 %vm492_vm1, %v1612_v18 }
  0x2d   : > { %1507 = vmatprep.mubr.msk.bf16.mxu0 %vm492_vm1, %v1613_v19  ;;  %1551 = vmatprep.mubr.msk.bf16.mxu1 %vm492_vm1, %v1614_v20 }
  0x34   : > { %1508 = vmatmul.mubr.msk.bf16.gmra.mxu0 %vm492_vm1, %v1615_v21  ;;  %1552 = vmatmul.mubr.msk.bf16.gmra.mxu1 %vm492_vm1, %v1616_v22 }
  0x35   : > { %1511 = vmatprep.mubr.msk.bf16.mxu0 %vm492_vm1, %v1617_v23  ;;  %1555 = vmatprep.mubr.msk.bf16.mxu1 %vm492_vm1, %v1618_v24 }
  0x3c   : > { %1512 = vmatmul.mubr.msk.bf16.gmra.mxu0 %vm492_vm1, %v1619_v25  ;;  %1556 = vmatmul.mubr.msk.bf16.gmra.mxu1 %vm492_vm1, %v1620_v26 }
  0x3d   : > { %1515 = vmatprep.mubr.msk.bf16.mxu0 %vm492_vm1, %v1621_v27  ;;  %1559 = vmatprep.mubr.msk.bf16.mxu1 %vm492_vm1, %v1622_v28  ;;  %v1852_v28 = vld [vmem:[%s1975_s2] ss:$0 sm:$0xff] }
  0x44   : > { %1516 = vmatmul.mubr.msk.bf16.gmra.mxu0 %vm492_vm1, %v1623_v29  ;;  %1560 = vmatmul.mubr.msk.bf16.gmra.mxu1 %vm492_vm1, %v1624_v30 }
  0x45   : > { %1519 = vmatprep.mubr.msk.bf16.mxu0 %vm492_vm1, %v1625_v31  ;;  %1563 = vmatprep.mubr.msk.bf16.mxu1 %vm492_vm1, %v1626_v32 }
  0x4c   : > { %1520 = vmatmul.mubr.msk.bf16.gmra.mxu0 %vm492_vm1, %v1627_v33  ;;  %1564 = vmatmul.mubr.msk.bf16.gmra.mxu1 %vm492_vm1, %v1628_v34 }
  0x4d   : > { %1523 = vmatprep.mubr.msk.bf16.mxu0 %vm492_vm1, %v1629_v35  ;;  %1567 = vmatprep.mubr.msk.bf16.mxu1 %vm492_vm1, %v1630_v36 }
  0x54   : > { %1524 = vmatmul.mubr.msk.bf16.gmra.mxu0 %vm492_vm1, %v1631_v37  ;;  %1568 = vmatmul.mubr.msk.bf16.gmra.mxu1 %vm492_vm1, %v1632_v38 }
  0x55   : > { %1527 = vmatprep.mubr.msk.bf16.mxu0 %vm492_vm1, %v1633_v39  ;;  %1571 = vmatprep.mubr.msk.bf16.mxu1 %vm492_vm1, %v1634_v40 }
  0x5c   : > { %1528 = vmatmul.mubr.msk.bf16.gmra.mxu0 %vm492_vm1, %v1635_v41  ;;  %1572 = vmatmul.mubr.msk.bf16.gmra.mxu1 %vm492_vm1, %v1636_v42 }
  0x5d   : > { %1531 = vmatprep.mubr.msk.bf16.mxu0 %vm492_vm1, %v1637_v43  ;;  %1575 = vmatprep.mubr.msk.bf16.mxu1 %vm492_vm1, %v1638_v44 }
  0x64   : > { %1532 = vmatmul.mubr.msk.bf16.gmra.mxu0 %vm492_vm1, %v1639_v45  ;;  %1576 = vmatmul.mubr.msk.bf16.gmra.mxu1 %vm492_vm1, %v1640_v46 }
  0xd4   : > { %v1779_v47 = vpop.f32.mrf.mxu0  ;;  %v1781_v48 = vpop.f32.mrf.mxu1 }
  0xd6   : > { %v663_v49 = vpop.f32.mrf.mxu0  ;;  %v839_v50 = vpop.f32.mrf.mxu1 }
  0xd8   : > { %v1783_v51 = vpop.f32.mrf.mxu0  ;;  %v1785_v52 = vpop.f32.mrf.mxu1 }
  0xda   : > { %v666_v53 = vpop.f32.mrf.mxu0  ;;  %v842_v54 = vpop.f32.mrf.mxu1 }
  0xdc   : > { %v1787_v55 = vpop.f32.mrf.mxu0  ;;  %v1789_v56 = vpop.f32.mrf.mxu1 }
  0xde   : > { %v679_v57 = vpop.f32.mrf.mxu0  ;;  %v855_v58 = vpop.f32.mrf.mxu1 }
  0xe0   : > { %v1791_v59 = vpop.f32.mrf.mxu0  ;;  %v1793_v60 = vpop.f32.mrf.mxu1 }
  0xe2   : > { %v1795_v61 = vpop.f32.mrf.mxu0  ;;  %v1797_v62 = vpop.f32.mrf.mxu1 }
  0xe4   : > { %v1799_v63 = vpop.f32.mrf.mxu0  ;;  %v1801_v0 = vpop.f32.mrf.mxu1 }
  0xe6   : > { %v1803_v1 = vpop.f32.mrf.mxu0  ;;  %v1805_v2 = vpop.f32.mrf.mxu1 }
  0xe8   : > { %v1807_v3 = vpop.f32.mrf.mxu0  ;;  %v1809_v4 = vpop.f32.mrf.mxu1 }
  0xea   : > { %v1811_v5 = vpop.f32.mrf.mxu0  ;;  %v1813_v6 = vpop.f32.mrf.mxu1 }
  0xec   : > { %v1815_v7 = vpop.f32.mrf.mxu0  ;;  %v1817_v8 = vpop.f32.mrf.mxu1 }
  0xee   : > { %v1819_v9 = vpop.f32.mrf.mxu0  ;;  %v1821_v10 = vpop.f32.mrf.mxu1 }
  0xf0   : > { %v1823_v11 = vpop.f32.mrf.mxu0  ;;  %v1825_v12 = vpop.f32.mrf.mxu1 }
  0xf2   : > { %v1827_v13 = vpop.f32.mrf.mxu0  ;;  %v1829_v14 = vpop.f32.mrf.mxu1 }
  0xf4   : > { %v1831_v15 = vpop.f32.mrf.mxu0  ;;  %v1833_v16 = vpop.f32.mrf.mxu1 }
  0xf6   : > { %v1835_v17 = vpop.f32.mrf.mxu0  ;;  %v1837_v18 = vpop.f32.mrf.mxu1 }
  0xf8   : > { %v1839_v19 = vpop.f32.mrf.mxu0  ;;  %v1841_v20 = vpop.f32.mrf.mxu1 }
  0xfa   : > { %v1843_v21 = vpop.f32.mrf.mxu0  ;;  %v1845_v22 = vpop.f32.mrf.mxu1 }
  0xfc   : > { %v1513_v23 = vpop.f32.mrf.mxu0  ;;  %v1557_v25 = vpop.f32.mrf.mxu1 }
  0xfd   : > { %v1014_v24 = vmax.f32 %v663_v49, %v1513_v23  ;;  %v1036_v26 = vmax.f32 %v839_v50, %v1557_v25 }
  0xfe   : > { %v1847_v27 = vpop.f32.mrf.mxu0  ;;  %v1854_v29 = vpop.f32.mrf.mxu1 }
  0xff   : > { %v1058_v30 = vmax.f32 %v1014_v24, %v1036_v26 }
 0x100   : > { %v1514_v31 = vpop.f32.mrf.mxu0  ;;  %v1558_v33 = vpop.f32.mrf.mxu1 }
 0x101   : > { %v1015_v32 = vmax.f32 %v666_v53, %v1514_v31  ;;  %v1087_v34 = vadd.f32 %v1852_v28, %v1058_v30  ;;  %v1037_v35 = vmax.f32 %v842_v54, %v1558_v33 }
 0x102   : > { %v1858_v36 = vpop.f32.mrf.mxu0  ;;  %v1860_v37 = vpop.f32.mrf.mxu1 }
 0x103   : > { %v1109_v38 = vmax.f32 %v1087_v34, 0.0  ;;  %v1059_v39 = vmax.f32 %v1015_v32, %v1037_v35 }
 0x104   : > { %v1517_v40 = vpop.f32.mrf.mxu0  ;;  %v1561_v42 = vpop.f32.mrf.mxu1 }
 0x105   : > { %v1018_v41 = vmax.f32 %v679_v57, %v1517_v40  ;;  %v1419_v43 = vpack.c.bf16 %v1109_v38, %v1109_v38  ;;  %v1088_v44 = vadd.f32 %v1852_v28, %v1059_v39  ;;  %v1040_v45 = vmax.f32 %v855_v58, %v1561_v42 }
 0x106   : > { %v759_v46 = vpop.f32.mrf.mxu0  ;;  %v935_v50 = vpop.f32.mrf.mxu1 }
 0x107   : > { %v1016_v49 = vmax.f32 %v1779_v47, %v759_v46  ;;  %1220 = vst.msk [vmem:[%s1865_s27] sm:$0xf] %vm1219_vm2, %v1419_v43  ;;  %v1110_v53 = vmax.f32 %v1088_v44, 0.0  ;;  %v1062_v54 = vmax.f32 %v1018_v41, %v1040_v45  ;;  %v1038_v23 = vmax.f32 %v1781_v48, %v935_v50 }
 0x108   : > { %v1518_v24 = vpop.f32.mrf.mxu0  ;;  %v1562_v57 = vpop.f32.mrf.mxu1 }
 0x109   : > { %v1019_v25 = vmax.f32 %v1795_v61, %v1518_v24  ;;  %v1420_v26 = vpack.c.bf16 %v1110_v53, %v1110_v53  ;;  %v1091_v30 = vadd.f32 %v1852_v28, %v1062_v54  ;;  %v1060_v31 = vmax.f32 %v1016_v49, %v1038_v23 }
 0x10a   : > { %v1041_v58 = vmax.f32 %v1797_v62, %v1562_v57  ;;  %v762_v32 = vpop.f32.mrf.mxu0  ;;  %v938_v33 = vpop.f32.mrf.mxu1 }
 0x10b   : > { %v1017_v47 = vmax.f32 %v1783_v51, %v762_v32  ;;  %1221 = vst.msk [vmem:[%s1865_s27 + $0x4] sm:$0xf] %vm1219_vm2, %v1420_v26  ;;  %v1113_v34 = vmax.f32 %v1091_v30, 0.0  ;;  %v1089_v48 = vadd.f32 %v1852_v28, %v1060_v31  ;;  %v1039_v61 = vmax.f32 %v1785_v52, %v938_v33 }
 0x10c   : > { %v1063_v35 = vmax.f32 %v1019_v25, %v1041_v58  ;;  %v1521_v38 = vpop.f32.mrf.mxu0  ;;  %v1565_v40 = vpop.f32.mrf.mxu1 }
 0x10d   : > { %v1022_v39 = vmax.f32 %v1803_v1, %v1521_v38  ;;  %v1423_v41 = vpack.c.bf16 %v1113_v34, %v1113_v34  ;;  %v1111_v42 = vmax.f32 %v1089_v48, 0.0  ;;  %v1061_v51 = vmax.f32 %v1017_v47, %v1039_v61 }
 0x10e   : > { %v1092_v62 = vadd.f32 %v1852_v28, %v1063_v35  ;;  %v775_v43 = vpop.f32.mrf.mxu0  ;;  %v1044_v44 = vmax.f32 %v1805_v2, %v1565_v40  ;;  %v951_v46 = vpop.f32.mrf.mxu1 }
 0x10f   : > { %v1020_v45 = vmax.f32 %v1787_v55, %v775_v43  ;;  %1224 = vst.msk [vmem:[%s1865_s27 + $0x10] sm:$0xf] %vm1219_vm2, %v1423_v41  ;;  %v1421_v49 = vpack.c.bf16 %v1111_v42, %v1111_v42  ;;  %v1090_v1 = vadd.f32 %v1852_v28, %v1061_v51  ;;  %v1042_v50 = vmax.f32 %v1789_v56, %v951_v46 }
 0x110   : > { %v1114_v52 = vmax.f32 %v1092_v62, 0.0  ;;  %v1522_v53 = vpop.f32.mrf.mxu0  ;;  %v1066_v54 = vmax.f32 %v1022_v39, %v1044_v44  ;;  %v1566_v24 = vpop.f32.mrf.mxu1 }
 0x111   : > { %v1023_v23 = vmax.f32 %v1811_v5, %v1522_v53  ;;  %1222 = vst.msk [vmem:[%s1865_s27 + $0x8] sm:$0xf] %vm1219_vm2, %v1421_v49  ;;  %v1112_v25 = vmax.f32 %v1090_v1, 0.0  ;;  %v1064_v55 = vmax.f32 %v1020_v45, %v1042_v50  ;;  %v1045_v57 = vmax.f32 %v1813_v6, %v1566_v24 }
 0x112   : > { %v1424_v2 = vpack.c.bf16 %v1114_v52, %v1114_v52  ;;  %v778_v26 = vpop.f32.mrf.mxu0  ;;  %v1095_v30 = vadd.f32 %v1852_v28, %v1066_v54  ;;  %v954_v58 = vpop.f32.mrf.mxu1 }
 0x113   : > { %v1021_v31 = vmax.f32 %v1791_v59, %v778_v26  ;;  %v1422_v56 = vpack.c.bf16 %v1112_v25, %v1112_v25  ;;  %v1093_v5 = vadd.f32 %v1852_v28, %v1064_v55  ;;  %v1067_v32 = vmax.f32 %v1023_v23, %v1045_v57 }
 0x114   : > { %1225 = vst.msk [vmem:[%s1865_s27 + $0x14] sm:$0xf] %vm1219_vm2, %v1424_v2  ;;  %v1043_v47 = vmax.f32 %v1793_v60, %v954_v58  ;;  %v1525_v33 = vpop.f32.mrf.mxu0  ;;  %v1117_v34 = vmax.f32 %v1095_v30, 0.0  ;;  %v1569_v6 = vpop.f32.mrf.mxu1 }
 0x115   : > { %v1026_v48 = vmax.f32 %v1819_v9, %v1525_v33  ;;  %1223 = vst.msk [vmem:[%s1865_s27 + $0xc] sm:$0xf] %vm1219_vm2, %v1422_v56  ;;  %v1115_v35 = vmax.f32 %v1093_v5, 0.0  ;;  %v1096_v59 = vadd.f32 %v1852_v28, %v1067_v32  ;;  %v1048_v38 = vmax.f32 %v1821_v10, %v1569_v6 }
 0x116   : > { %v1065_v61 = vmax.f32 %v1021_v31, %v1043_v47  ;;  %v791_v39 = vpop.f32.mrf.mxu0  ;;  %v1427_v40 = vpack.c.bf16 %v1117_v34, %v1117_v34  ;;  %v967_v60 = vpop.f32.mrf.mxu1 }
 0x117   : > { %v1024_v41 = vmax.f32 %v1799_v63, %v791_v39  ;;  %v1425_v42 = vpack.c.bf16 %v1115_v35, %v1115_v35  ;;  %v1118_v62 = vmax.f32 %v1096_v59, 0.0  ;;  %v1070_v51 = vmax.f32 %v1026_v48, %v1048_v38 }
 0x118   : > { %v1094_v9 = vadd.f32 %v1852_v28, %v1065_v61  ;;  %v1526_v43 = vpop.f32.mrf.mxu0  ;;  %1228 = vst.msk [vmem:[%s1865_s27 + $0x20] sm:$0xf] %vm1219_vm2, %v1427_v40  ;;  %v1046_v44 = vmax.f32 %v1801_v0, %v967_v60  ;;  %v1570_v46 = vpop.f32.mrf.mxu1 }
 0x119   : > { %v1027_v45 = vmax.f32 %v1827_v13, %v1526_v43  ;;  %1226 = vst.msk [vmem:[%s1865_s27 + $0x18] sm:$0xf] %vm1219_vm2, %v1425_v42  ;;  %v1428_v10 = vpack.c.bf16 %v1118_v62, %v1118_v62  ;;  %v1099_v63 = vadd.f32 %v1852_v28, %v1070_v51  ;;  %v1049_v52 = vmax.f32 %v1829_v14, %v1570_v46 }
 0x11a   : > { %v1116_v49 = vmax.f32 %v1094_v9, 0.0  ;;  %v794_v1 = vpop.f32.mrf.mxu0  ;;  %v1068_v50 = vmax.f32 %v1024_v41, %v1046_v44  ;;  %v970_v54 = vpop.f32.mrf.mxu1 }
 0x11b   : > { %v1025_v53 = vmax.f32 %v1807_v3, %v794_v1  ;;  %1229 = vst.msk [vmem:[%s1865_s27 + $0x24] sm:$0xf] %vm1219_vm2, %v1428_v10  ;;  %v1121_v23 = vmax.f32 %v1099_v63, 0.0  ;;  %v1071_v13 = vmax.f32 %v1027_v45, %v1049_v52  ;;  %v1047_v24 = vmax.f32 %v1809_v4, %v970_v54 }
 0x11c   : > { %v1426_v0 = vpack.c.bf16 %v1116_v49, %v1116_v49  ;;  %v1529_v2 = vpop.f32.mrf.mxu0  ;;  %v1097_v25 = vadd.f32 %v1852_v28, %v1068_v50  ;;  %v1573_v57 = vpop.f32.mrf.mxu1 }
 0x11d   : > { %v1030_v55 = vmax.f32 %v1835_v17, %v1529_v2  ;;  %v1431_v14 = vpack.c.bf16 %v1121_v23, %v1121_v23  ;;  %v1100_v3 = vadd.f32 %v1852_v28, %v1071_v13  ;;  %v1069_v26 = vmax.f32 %v1025_v53, %v1047_v24 }
 0x11e   : > { %1227 = vst.msk [vmem:[%s1865_s27 + $0x1c] sm:$0xf] %vm1219_vm2, %v1426_v0  ;;  %v1052_v30 = vmax.f32 %v1837_v18, %v1573_v57  ;;  %v807_v31 = vpop.f32.mrf.mxu0  ;;  %v1119_v58 = vmax.f32 %v1097_v25, 0.0  ;;  %v983_v4 = vpop.f32.mrf.mxu1 }
 0x11f   : > { %v1028_v56 = vmax.f32 %v1815_v7, %v807_v31  ;;  %1232 = vst.msk [vmem:[%s1865_s27 + $0x30] sm:$0xf] %vm1219_vm2, %v1431_v14  ;;  %v1122_v5 = vmax.f32 %v1100_v3, 0.0  ;;  %v1098_v17 = vadd.f32 %v1852_v28, %v1069_v26  ;;  %v1050_v47 = vmax.f32 %v1817_v8, %v983_v4 }
 0x120   : > { %v1074_v32 = vmax.f32 %v1030_v55, %v1052_v30  ;;  %v1530_v33 = vpop.f32.mrf.mxu0  ;;  %v1429_v34 = vpack.c.bf16 %v1119_v58, %v1119_v58  ;;  %v1574_v18 = vpop.f32.mrf.mxu1 }
 0x121   : > { %v1031_v48 = vmax.f32 %v1843_v21, %v1530_v33  ;;  %v1432_v6 = vpack.c.bf16 %v1122_v5, %v1122_v5  ;;  %v1120_v35 = vmax.f32 %v1098_v17, 0.0  ;;  %v1072_v59 = vmax.f32 %v1028_v56, %v1050_v47 }
 0x122   : > { %v1103_v7 = vadd.f32 %v1852_v28, %v1074_v32  ;;  %v810_v61 = vpop.f32.mrf.mxu0  ;;  %1230 = vst.msk [vmem:[%s1865_s27 + $0x28] sm:$0xf] %vm1219_vm2, %v1429_v34  ;;  %v1053_v38 = vmax.f32 %v1845_v22, %v1574_v18  ;;  %v986_v40 = vpop.f32.mrf.mxu1 }
 0x123   : > { %v1029_v39 = vmax.f32 %v1823_v11, %v810_v61  ;;  %1233 = vst.msk [vmem:[%s1865_s27 + $0x34] sm:$0xf] %vm1219_vm2, %v1432_v6  ;;  %v1430_v8 = vpack.c.bf16 %v1120_v35, %v1120_v35  ;;  %v1101_v21 = vadd.f32 %v1852_v28, %v1072_v59  ;;  %v1051_v60 = vmax.f32 %v1825_v12, %v986_v40 }
 0x124   : > { %v1125_v41 = vmax.f32 %v1103_v7, 0.0  ;;  %v1533_v42 = vpop.f32.mrf.mxu0  ;;  %v1075_v62 = vmax.f32 %v1031_v48, %v1053_v38  ;;  %v1577_v51 = vpop.f32.mrf.mxu1 }
 0x125   : > { %v1034_v9 = vmax.f32 %v1847_v27, %v1533_v42  ;;  %1231 = vst.msk [vmem:[%s1865_s27 + $0x2c] sm:$0xf] %vm1219_vm2, %v1430_v8  ;;  %v1123_v43 = vmax.f32 %v1101_v21, 0.0  ;;  %v1073_v11 = vmax.f32 %v1029_v39, %v1051_v60  ;;  %v1056_v44 = vmax.f32 %v1854_v29, %v1577_v51 }
 0x126   : > { %v1435_v22 = vpack.c.bf16 %v1125_v41, %v1125_v41  ;;  %v823_v45 = vpop.f32.mrf.mxu0  ;;  %v1104_v46 = vadd.f32 %v1852_v28, %v1075_v62  ;;  %v999_v49 = vpop.f32.mrf.mxu1 }
 0x127   : > { %v1032_v10 = vmax.f32 %v1831_v15, %v823_v45  ;;  %v1433_v12 = vpack.c.bf16 %v1123_v43, %v1123_v43  ;;  %v1102_v27 = vadd.f32 %v1852_v28, %v1073_v11  ;;  %v1078_v63 = vmax.f32 %v1034_v9, %v1056_v44 }
 0x128   : > { %1236 = vst.msk [vmem:[%s1865_s27 + $0x40] sm:$0xf] %vm1219_vm2, %v1435_v22  ;;  %v1054_v52 = vmax.f32 %v1833_v16, %v999_v49  ;;  %v1534_v1 = vpop.f32.mrf.mxu0  ;;  %v1126_v50 = vmax.f32 %v1104_v46, 0.0  ;;  %v1578_v29 = vpop.f32.mrf.mxu1 }
 0x129   : > { %v1035_v53 = vmax.f32 %v1858_v36, %v1534_v1  ;;  %1234 = vst.msk [vmem:[%s1865_s27 + $0x38] sm:$0xf] %vm1219_vm2, %v1433_v12  ;;  %v1124_v54 = vmax.f32 %v1102_v27, 0.0  ;;  %v1107_v15 = vadd.f32 %v1852_v28, %v1078_v63  ;;  %v1057_v23 = vmax.f32 %v1860_v37, %v1578_v29 }
 0x12a   : > { %v1076_v0 = vmax.f32 %v1032_v10, %v1054_v52  ;;  %v826_v13 = vpop.f32.mrf.mxu0  ;;  %v1436_v24 = vpack.c.bf16 %v1126_v50, %v1126_v50  ;;  %v1002_v2 = vpop.f32.mrf.mxu1 }
 0x12b   : > { %v1033_v16 = vmax.f32 %v1839_v19, %v826_v13  ;;  %v1434_v25 = vpack.c.bf16 %v1124_v54, %v1124_v54  ;;  %v1129_v55 = vmax.f32 %v1107_v15, 0.0  ;;  %v1079_v57 = vmax.f32 %v1035_v53, %v1057_v23 }
 0x12c   : > { %v1105_v36 = vadd.f32 %v1852_v28, %v1076_v0  ;;  %1237 = vst.msk [vmem:[%s1865_s27 + $0x44] sm:$0xf] %vm1219_vm2, %v1436_v24  ;;  %v1055_v14 = vmax.f32 %v1841_v20, %v1002_v2 }
 0x12d   : > { %1235 = vst.msk [vmem:[%s1865_s27 + $0x3c] sm:$0xf] %vm1219_vm2, %v1434_v25  ;;  %v1439_v37 = vpack.c.bf16 %v1129_v55, %v1129_v55  ;;  %v1108_v26 = vadd.f32 %v1852_v28, %v1079_v57 }
 0x12e   : > { %v1127_v3 = vmax.f32 %v1105_v36, 0.0  ;;  %v1077_v19 = vmax.f32 %v1033_v16, %v1055_v14 }
 0x12f   : > { %1240 = vst.msk [vmem:[%s1865_s27 + $0x50] sm:$0xf] %vm1219_vm2, %v1439_v37  ;;  %v1130_v31 = vmax.f32 %v1108_v26, 0.0 }
 0x130   : > { %v1437_v30 = vpack.c.bf16 %v1127_v3, %v1127_v3  ;;  %v1106_v58 = vadd.f32 %v1852_v28, %v1077_v19 }
 0x131   : > { %v1440_v56 = vpack.c.bf16 %v1130_v31, %v1130_v31 }
 0x132   : > { %1238 = vst.msk [vmem:[%s1865_s27 + $0x48] sm:$0xf] %vm1219_vm2, %v1437_v30  ;;  %v1128_v4 = vmax.f32 %v1106_v58, 0.0 }
 0x133   : > { %1241 = vst.msk [vmem:[%s1865_s27 + $0x54] sm:$0xf] %vm1219_vm2, %v1440_v56 }
 0x134   : > { %v1438_v20 = vpack.c.bf16 %v1128_v4, %v1128_v4 }
 0x136   : > { %1239 = vst.msk [vmem:[%s1865_s27 + $0x4c] sm:$0xf] %vm1219_vm2, %v1438_v20 }
 0x137 PF: > { %s13_s12 = sadd.s32 1, %s1647_s12  }
 0x138   : > { %p10_p4 = scmp.ge.s32.totalorder %s13_s12, 4  }
 0x13a   :  { %12 = sbr.rel (!%p10_p4) target bundleno = 1 (0x1), region = 62 }

// kernel: cnn_min_forward.5
= control target key start
LH: loop header
LB: loop body
LE: loop exit
PB: predicated region body
PF: predicated region fallthrough
CT: control target
= control target key end

     0   :  { %s1542_s12 = smov 0   ;;  %s1737_s0 = inlined_call_operand.vmem [shape: bf16[2,128,576], index: 0, kind: input, shape index: {}]   ;;  %s1738_s1 = inlined_call_operand.vmem [shape: bf16[576,128], index: 1, kind: input, shape index: {}]   ;;  %s1739_s2 = inlined_call_operand.vmem [shape: f32[1,128], index: 2, kind: input, shape index: {}]   ;;  %s1740_s3 = inlined_call_operand.vmem [shape: bf16[2,32,128], index: 3, kind: output, shape index: {}]  }
   0x1 LB: > { %s1126_s13 = sadd.s32 4294967295, %s1520_s12   ;;  %p1130_p0 = scmp.ge.s32.totalorder %s1520_s12, 1  ;;  %s1520_s12 = sphi %s1542_s12, %s13_s12  }
   0x2   : > { %p137_p1 = scmp.lt.s32.totalorder %s1520_s12, 3 }
   0x4   : > { %p138_p2 = pnand %p1130_p0, %p137_p1 }
   0x6   : > { %141 = sbr.rel (%p138_p2) target bundleno = 330 (0x14a), region = 32 }
   0xb   : > { %v1422_v0 = vld [vmem:[%s1738_s1 + $0x78] sm:$0xff]   ;;  %v1426_v4 = vld [vmem:[%s1738_s1 + $0x70] sm:$0xff]   ;;  %v1430_v8 = vld [vmem:[%s1738_s1 + $0x68] sm:$0xff]   ;;  %p161_p3 = scmp.lt.s32.totalorder %s1126_s13, 1  ;;  %vm708_vm0 = vcmask 523264  }
   0xc   : > { %v1423_v1 = vld [vmem:[%s1738_s1 + $0xf8] sm:$0xff]   ;;  %1241 = vmatprep.subr.bf16.mxu0 %v1422_v0  ;;  %v1427_v5 = vld [vmem:[%s1738_s1 + $0xf0] sm:$0xff]   ;;  %v1431_v9 = vld [vmem:[%s1738_s1 + $0xe8] sm:$0xff]  }
   0xd   : > { %v1424_v2 = vld [vmem:[%s1738_s1 + $0x38] sm:$0xff]   ;;  %1305 = vmatprep.subr.bf16.mxu1 %v1423_v1  ;;  %v1428_v6 = vld [vmem:[%s1738_s1 + $0x30] sm:$0xff]   ;;  %v1432_v10 = vld [vmem:[%s1738_s1 + $0x28] sm:$0xff]   ;;  %s1748_s13 = smov (!%p161_p3, %s1126_s13), 1 }
   0xe   : > { %v1425_v3 = vld [vmem:[%s1738_s1 + $0xb8] sm:$0xff]   ;;  %1242 = vmatpush3.bf16.msra.mxu0 %v1424_v2  ;;  %v1429_v7 = vld [vmem:[%s1738_s1 + $0xb0] sm:$0xff]   ;;  %v1433_v11 = vld [vmem:[%s1738_s1 + $0xa8] sm:$0xff]   ;;  %s1413_s16 = smul.u32 320, %s1748_s13  ;;  %s1225_s17 = sshll.u32 %s1748_s13, 4 }
   0xf   : > { %1306 = vmatpush3.bf16.msra.mxu1 %v1425_v3  ;;  %1243 = vmatprep.subr.bf16.mxu0 %v1426_v4  ;;  %v1434_v12 = vld [vmem:[%s1738_s1 + $0x60] sm:$0xff]   ;;  %v1438_v16 = vld [vmem:[%s1738_s1 + $0x58] sm:$0xff]   ;;  %v1442_v20 = vld [vmem:[%s1738_s1 + $0x50] sm:$0xff]   ;;  %s170_s20 = scalar_lea.vmem %s1740_s3, %s1225_s17 }
  0x10   : > { %1307 = vmatprep.subr.bf16.mxu1 %v1427_v5  ;;  %v1435_v13 = vld [vmem:[%s1738_s1 + $0xe0] sm:$0xff]   ;;  %v1439_v17 = vld [vmem:[%s1738_s1 + $0xd8] sm:$0xff]   ;;  %v1443_v21 = vld [vmem:[%s1738_s1 + $0xd0] sm:$0xff]   ;;  %s1650_s27 = scalar_lea.vmem %s1737_s0, %s1413_s16 }
  0x11   : > { %v1436_v14 = vld [vmem:[%s1738_s1 + $0x20] sm:$0xff]   ;;  %v1440_v18 = vld [vmem:[%s1738_s1 + $0x18] sm:$0xff]   ;;  %v1444_v22 = vld [vmem:[%s1738_s1 + $0x10] sm:$0xff]  }
  0x12   : > { %1244 = vmatpush3.bf16.msra.mxu0 %v1428_v6  ;;  %v1437_v15 = vld [vmem:[%s1738_s1 + $0xa0] sm:$0xff]   ;;  %v1441_v19 = vld [vmem:[%s1738_s1 + $0x98] sm:$0xff]   ;;  %v1445_v23 = vld [vmem:[%s1738_s1 + $0x90] sm:$0xff]  }
  0x13   : > { %1308 = vmatpush3.bf16.msra.mxu1 %v1429_v7  ;;  %1245 = vmatprep.subr.bf16.mxu0 %v1430_v8  ;;  %v1446_v24 = vld [vmem:[%s1738_s1 + $0x48] sm:$0xff]   ;;  %v1450_v28 = vld [vmem:[%s1738_s1 + $0x40] sm:$0xff]   ;;  %v1460_v36 = vld [vmem:[%s1738_s1 + $0x118] sm:$0xff]  }
  0x14   : > { %1309 = vmatprep.subr.bf16.mxu1 %v1431_v9  ;;  %v1447_v25 = vld [vmem:[%s1738_s1 + $0xc8] sm:$0xff]   ;;  %v1451_v29 = vld [vmem:[%s1738_s1 + $0xc0] sm:$0xff]   ;;  %v1473_v42 = vld [vmem:[%s1738_s1 + $0x110] sm:$0xff]  }
  0x15   : > { %v1448_v26 = vld [vmem:[%s1738_s1 + $0x8] sm:$0xff]   ;;  %v1452_v30 = vld [vmem:[%s1738_s1] sm:$0xff]   ;;  %v1469_v43 = vld [vmem:[%s1650_s27 + $0x5c] ss:$20 sps:$4 sm:$0xff]  }
  0x16   : > { %1246 = vmatpush3.bf16.msra.mxu0 %v1432_v10  ;;  %v1449_v27 = vld [vmem:[%s1738_s1 + $0x88] sm:$0xff]   ;;  %v1453_v31 = vld [vmem:[%s1738_s1 + $0x80] sm:$0xff]   ;;  %v1474_v47 = vld [vmem:[%s1650_s27 + $0x7c] ss:$20 sps:$4 sm:$0xff]  }
  0x17   : > { %1310 = vmatpush3.bf16.msra.mxu1 %v1433_v11  ;;  %1247 = vmatprep.subr.bf16.mxu0 %v1434_v12  ;;  %v1454_v32 = vld [vmem:[%s1650_s27] ss:$20 sps:$4 sm:$0xff]   ;;  %v1456_v33 = vld [vmem:[%s1650_s27 + $0x4] ss:$20 sps:$4 sm:$0xff]   ;;  %v1457_v34 = vld [vmem:[%s1650_s27 + $0x8] ss:$20 sps:$4 sm:$0xff]  }
  0x18   : > { %1311 = vmatprep.subr.bf16.mxu1 %v1435_v13  ;;  %v1459_v35 = vld [vmem:[%s1650_s27 + $0xc] ss:$20 sps:$4 sm:$0xff]   ;;  %765 = vmatprep.mubr.bf16.mxu0 %v1456_v33  ;;  %v1463_v38 = vld [vmem:[%s1650_s27 + $0x34] ss:$20 sps:$4 sm:$0xff]   ;;  %v1466_v40 = vld [vmem:[%s1650_s27 + $0x30] ss:$20 sps:$4 sm:$0xff]  }
  0x19   : > { %862 = vmatprep.mubr.bf16.mxu1 %v1459_v35  ;;  %v1461_v37 = vld [vmem:[%s1650_s27 + $0x2c] ss:$20 sps:$4 sm:$0xff]   ;;  %v1465_v39 = vld [vmem:[%s1650_s27 + $0x28] ss:$20 sps:$4 sm:$0xff]   ;;  %v1471_v44 = vld [vmem:[%s1650_s27 + $0x50] ss:$20 sps:$4 sm:$0xff]  }
  0x1a   : > { %1248 = vmatpush3.bf16.msra.mxu0 %v1436_v14  ;;  %v1467_v41 = vld [vmem:[%s1650_s27 + $0x54] ss:$20 sps:$4 sm:$0xff]   ;;  %v1472_v45 = vld [vmem:[%s1650_s27 + $0x58] ss:$20 sps:$4 sm:$0xff]   ;;  %v1499_v49 = vld [vmem:[%s1738_s1 + $0x100] sm:$0xff]  }
  0x1b   : > { %1312 = vmatpush3.bf16.msra.mxu1 %v1437_v15  ;;  %1249 = vmatprep.subr.bf16.mxu0 %v1438_v16  ;;  %v1486_v46 = vld [vmem:[%s1738_s1 + $0x108] sm:$0xff]   ;;  %v1476_v48 = vld [vmem:[%s1650_s27 + $0x84] ss:$20 sps:$4 sm:$0xff]   ;;  %v1479_v51 = vld [vmem:[%s1650_s27 + $0x80] ss:$20 sps:$4 sm:$0xff]  }
  0x1c   : > { %1313 = vmatprep.subr.bf16.mxu1 %v1439_v17  ;;  %v1478_v50 = vld [vmem:[%s1650_s27 + $0x78] ss:$20 sps:$4 sm:$0xff]   ;;  %v1484_v54 = vld [vmem:[%s1650_s27 + $0xa0] ss:$20 sps:$4 sm:$0xff]   ;;  %v1485_v55 = vld [vmem:[%s1650_s27 + $0xa8] ss:$20 sps:$4 sm:$0xff]  }
  0x1d   : > { %v1480_v52 = vld [vmem:[%s1650_s27 + $0xa4] ss:$20 sps:$4 sm:$0xff]   ;;  %v1482_v53 = vld [vmem:[%s1650_s27 + $0xac] ss:$20 sps:$4 sm:$0xff]   ;;  %v1489_v57 = vld [vmem:[%s1650_s27 + $0xd4] ss:$20 sps:$4 sm:$0xff]  }
  0x1e   : > { %1250 = vmatpush3.bf16.msra.mxu0 %v1440_v18  ;;  %v1487_v56 = vld [vmem:[%s1650_s27 + $0xcc] ss:$20 sps:$4 sm:$0xff]   ;;  %v1491_v58 = vld [vmem:[%s1650_s27 + $0xc8] ss:$20 sps:$4 sm:$0xff]   ;;  %v1492_v59 = vld [vmem:[%s1650_s27 + $0xd0] ss:$20 sps:$4 sm:$0xff]  }
  0x1f   : > { %1314 = vmatpush3.bf16.msra.mxu1 %v1441_v19  ;;  %1251 = vmatprep.subr.bf16.mxu0 %v1442_v20  ;;  %v1493_v60 = vld [vmem:[%s1650_s27 + $0xf4] ss:$20 sps:$4 sm:$0xff]   ;;  %v1495_v61 = vld [vmem:[%s1650_s27 + $0xfc] ss:$20 sps:$4 sm:$0xff]   ;;  %v1498_v63 = vld [vmem:[%s1650_s27 + $0xf8] ss:$20 sps:$4 sm:$0xff]  }
  0x20   : > { %1315 = vmatprep.subr.bf16.mxu1 %v1443_v21  ;;  %v1497_v62 = vld [vmem:[%s1650_s27 + $0xf0] ss:$20 sps:$4 sm:$0xff]   ;;  %v1504_v2 = vld [vmem:[%s1650_s27 + $0x118] ss:$20 sps:$4 sm:$0xff]   ;;  %v1505_v3 = vld [vmem:[%s1650_s27 + $0x120] ss:$20 sps:$4 sm:$0xff]  }
  0x21   : > { %v1500_v0 = vld [vmem:[%s1650_s27 + $0x11c] ss:$20 sps:$4 sm:$0xff]   ;;  %v1502_v1 = vld [vmem:[%s1650_s27 + $0x124] ss:$20 sps:$4 sm:$0xff]   ;;  %v1510_v8 = vld [vmem:[%s1650_s27 + $0x60] ss:$20 sps:$4 sm:$0xff]  }
  0x22   : > { %1252 = vmatpush3.bf16.msra.mxu0 %v1444_v22  ;;  %v1506_v4 = vld [vmem:[%s1650_s27 + $0x10] ss:$20 sps:$4 sm:$0xff]   ;;  %v1508_v6 = vld [vmem:[%s1650_s27 + $0x38] ss:$20 sps:$4 sm:$0xff]   ;;  %v1511_v9 = vld [vmem:[%s1650_s27 + $0x100] ss:$20 sps:$4 sm:$0xff]  }
  0x23   : > { %1316 = vmatpush3.bf16.msra.mxu1 %v1445_v23  ;;  %1253 = vmatprep.subr.bf16.mxu0 %v1446_v24  ;;  %v1507_v5 = vld [vmem:[%s1650_s27 + $0xb0] ss:$20 sps:$4 sm:$0xff]   ;;  %v1509_v7 = vld [vmem:[%s1650_s27 + $0xd8] ss:$20 sps:$4 sm:$0xff]   ;;  %v1512_v10 = vld [vmem:[%s1650_s27 + $0x88] ss:$20 sps:$4 sm:$0xff]  }
  0x24   : > { %1317 = vmatprep.subr.bf16.mxu1 %v1447_v25  ;;  %v1513_v11 = vld [vmem:[%s1650_s27 + $0x128] ss:$20 sps:$4 sm:$0xff]  }
  0x26   : > { %1254 = vmatpush3.bf16.msra.mxu0 %v1448_v26 }
  0x27   : > { %1318 = vmatpush3.bf16.msra.mxu1 %v1449_v27  ;;  %1255 = vmatprep.subr.bf16.mxu0 %v1450_v28 }
  0x28   : > { %1319 = vmatprep.subr.bf16.mxu1 %v1451_v29 }
  0x2a   : > { %1256 = vmatpush3.bf16.msra.mxu0 %v1452_v30 }
  0x2b   : > { %1320 = vmatpush3.bf16.msra.mxu1 %v1453_v31  ;;  %1381 = vmatprep.subr.bf16.mxu0 %v1460_v36 }
  0x2c   : > { %1405 = vmatprep.subr.bf16.mxu1 %v1460_v36 }
  0x2d   : > { %766 = vmatmul.mubr.bf16.vlgmr.msra.gmra.mxu0 %v1454_v32 }
  0x2e   : > { %863 = vmatmul.mubr.bf16.vlgmr.msra.gmra.mxu1 %v1457_v34  ;;  %1382 = vmatpush3.bf16.msra.mxu0 %v1460_v36 }
  0x2f   : > { %1409 = vmatpush3.bf16.msra.mxu1 %v1460_v36  ;;  %773 = vmatprep.mubr.bf16.mxu0 %v1461_v37 }
  0x30   : > { %870 = vmatprep.mubr.bf16.mxu1 %v1463_v38  ;;  %1383 = vmatprep.subr.bf16.mxu0 %v1473_v42 }
  0x31   : > { %1406 = vmatprep.subr.bf16.mxu1 %v1473_v42 }
  0x32   : > { %1384 = vmatpush3.bf16.msra.mxu0 %v1473_v42 }
  0x33   : > { %1410 = vmatpush3.bf16.msra.mxu1 %v1473_v42  ;;  %1385 = vmatprep.subr.bf16.mxu0 %v1486_v46 }
  0x34   : > { %1407 = vmatprep.subr.bf16.mxu1 %v1486_v46 }
  0x35   : > { %774 = vmatmul.mubr.bf16.gmra.mxu0 %v1465_v39 }
  0x36   : > { %871 = vmatmul.mubr.bf16.gmra.mxu1 %v1466_v40  ;;  %781 = vmatprep.mubr.bf16.mxu0 %v1467_v41 }
  0x37   : > { %878 = vmatprep.mubr.bf16.mxu1 %v1469_v43  ;;  %1386 = vmatpush3.bf16.msra.mxu0 %v1486_v46 }
  0x38   : > { %1411 = vmatpush3.bf16.msra.mxu1 %v1486_v46  ;;  %1387 = vmatprep.subr.bf16.mxu0 %v1499_v49 }
  0x39   : > { %1408 = vmatprep.subr.bf16.mxu1 %v1499_v49 }
  0x3b   : > { %1388 = vmatpush3.bf16.msra.mxu0 %v1499_v49 }
  0x3c   : > { %1412 = vmatpush3.bf16.msra.mxu1 %v1499_v49 }
  0x3d   : > { %782 = vmatmul.mubr.bf16.gmra.mxu0 %v1471_v44 }
  0x3e   : > { %879 = vmatmul.mubr.bf16.gmra.mxu1 %v1472_v45  ;;  %789 = vmatprep.mubr.bf16.mxu0 %v1474_v47 }
  0x3f   : > { %886 = vmatprep.mubr.bf16.mxu1 %v1476_v48 }
  0x45   : > { %790 = vmatmul.mubr.bf16.gmra.mxu0 %v1478_v50 }
  0x46   : > { %887 = vmatmul.mubr.bf16.gmra.mxu1 %v1479_v51  ;;  %797 = vmatprep.mubr.bf16.mxu0 %v1480_v52 }
  0x47   : > { %894 = vmatprep.mubr.bf16.mxu1 %v1482_v53 }
  0x4d   : > { %798 = vmatmul.mubr.bf16.gmra.mxu0 %v1484_v54 }
  0x4e   : > { %895 = vmatmul.mubr.bf16.gmra.mxu1 %v1485_v55  ;;  %805 = vmatprep.mubr.bf16.mxu0 %v1487_v56 }
  0x4f   : > { %902 = vmatprep.mubr.bf16.mxu1 %v1489_v57 }
  0x55   : > { %806 = vmatmul.mubr.bf16.gmra.mxu0 %v1491_v58 }
  0x56   : > { %903 = vmatmul.mubr.bf16.gmra.mxu1 %v1492_v59  ;;  %813 = vmatprep.mubr.bf16.mxu0 %v1493_v60 }
  0x57   : > { %910 = vmatprep.mubr.bf16.mxu1 %v1495_v61 }
  0x5d   : > { %814 = vmatmul.mubr.bf16.gmra.mxu0 %v1497_v62 }
  0x5e   : > { %911 = vmatmul.mubr.bf16.gmra.mxu1 %v1498_v63  ;;  %821 = vmatprep.mubr.bf16.mxu0 %v1500_v0 }
  0x5f   : > { %918 = vmatprep.mubr.bf16.mxu1 %v1502_v1 }
  0x65   : > { %822 = vmatmul.mubr.bf16.gmra.mxu0 %v1504_v2 }
  0x66   : > { %919 = vmatmul.mubr.bf16.gmra.mxu1 %v1505_v3  ;;  %1389 = vmatprep.mubr.msk.bf16.mxu0 %vm708_vm0, %v1506_v4 }
  0x67   : > { %1397 = vmatprep.mubr.msk.bf16.mxu1 %vm708_vm0, %v1507_v5 }
  0x6d   : > { %1390 = vmatmul.mubr.msk.bf16.vlgmr.msra.gmra.mxu0 %vm708_vm0, %v1508_v6 }
  0x6e   : > { %1398 = vmatmul.mubr.msk.bf16.vlgmr.msra.gmra.mxu1 %vm708_vm0, %v1509_v7  ;;  %1393 = vmatprep.mubr.msk.bf16.mxu0 %vm708_vm0, %v1510_v8 }
  0x6f   : > { %1401 = vmatprep.mubr.msk.bf16.mxu1 %vm708_vm0, %v1511_v9 }
  0x75   : > { %1394 = vmatmul.mubr.msk.bf16.gmra.mxu0 %vm708_vm0, %v1512_v10 }
  0x76   : > { %1402 = vmatmul.mubr.msk.bf16.gmra.mxu1 %vm708_vm0, %v1513_v11 }
  0xed   : > { %v1257_v12 = vpop.f32.mrf.mxu0 }
  0xee   : > { %v1321_v13 = vpop.f32.mrf.mxu1 }
  0xef   : > { %v1258_v14 = vpop.f32.mrf.mxu0 }
  0xf0   : > { %v1259_v15 = vadd.f32 %v1258_v14, %v1257_v12  ;;  %v1322_v16 = vpop.f32.mrf.mxu1 }
  0xf1   : > { %v1323_v17 = vadd.f32 %v1322_v16, %v1321_v13  ;;  %v1260_v18 = vpop.f32.mrf.mxu0 }
  0xf2   : > { %v1324_v19 = vpop.f32.mrf.mxu1 }
  0xf3   : > { %v1261_v20 = vpop.f32.mrf.mxu0  ;;  %v1718_v21 = vadd.f32 %v1323_v17, %v1259_v15 }
  0xf4   : > { %v1262_v22 = vadd.f32 %v1261_v20, %v1260_v18  ;;  %v1325_v23 = vpop.f32.mrf.mxu1 }
  0xf5   : > { %1741 = vst [vmem:[#allocation2_spill] sm:$0xff] %v1718_v21  ;;  %v1326_v24 = vadd.f32 %v1325_v23, %v1324_v19  ;;  %v1263_v25 = vpop.f32.mrf.mxu0 }
  0xf6   : > { %v1327_v26 = vpop.f32.mrf.mxu1 }
  0xf7   : > { %v1264_v27 = vpop.f32.mrf.mxu0  ;;  %v1720_v28 = vadd.f32 %v1326_v24, %v1262_v22 }
  0xf8   : > { %v1265_v29 = vadd.f32 %v1264_v27, %v1263_v25  ;;  %v1328_v30 = vpop.f32.mrf.mxu1 }
  0xf9   : > { %1742 = vst [vmem:[#allocation3_spill] sm:$0xff] %v1720_v28  ;;  %v1329_v31 = vadd.f32 %v1328_v30, %v1327_v26  ;;  %v1266_v32 = vpop.f32.mrf.mxu0 }
  0xfa   : > { %v1330_v33 = vpop.f32.mrf.mxu1 }
  0xfb   : > { %v1267_v34 = vpop.f32.mrf.mxu0  ;;  %v1722_v35 = vadd.f32 %v1329_v31, %v1265_v29 }
  0xfc   : > { %v1331_v36 = vpop.f32.mrf.mxu1  ;;  %v1268_v22 = vadd.f32 %v1267_v34, %v1266_v32 }
  0xfd   : > { %1743 = vst [vmem:[#allocation4_spill] sm:$0xff] %v1722_v35  ;;  %v1269_v37 = vpop.f32.mrf.mxu0  ;;  %v1332_v23 = vadd.f32 %v1331_v36, %v1330_v33 }
  0xfe   : > { %v1333_v38 = vpop.f32.mrf.mxu1 }
  0xff   : > { %v1270_v39 = vpop.f32.mrf.mxu0 }
 0x100   : > { %v1334_v40 = vpop.f32.mrf.mxu1  ;;  %v1271_v24 = vadd.f32 %v1270_v39, %v1269_v37 }
 0x101   : > { %v1272_v41 = vpop.f32.mrf.mxu0  ;;  %v1335_v25 = vadd.f32 %v1334_v40, %v1333_v38 }
 0x102   : > { %v1336_v42 = vpop.f32.mrf.mxu1 }
 0x103   : > { %v1273_v43 = vpop.f32.mrf.mxu0 }
 0x104   : > { %v1337_v44 = vpop.f32.mrf.mxu1  ;;  %v1274_v27 = vadd.f32 %v1273_v43, %v1272_v41  ;;  %v876_v43 = vadd.f32 %v1332_v23, %v1268_v22 }
 0x105   : > { %v1275_v45 = vpop.f32.mrf.mxu0  ;;  %v1338_v29 = vadd.f32 %v1337_v44, %v1336_v42 }
 0x106   : > { %v1339_v46 = vpop.f32.mrf.mxu1 }
 0x107   : > { %v1276_v47 = vpop.f32.mrf.mxu0 }
 0x108   : > { %v1340_v48 = vpop.f32.mrf.mxu1  ;;  %v1277_v30 = vadd.f32 %v1276_v47, %v1275_v45  ;;  %v881_v45 = vadd.f32 %v1335_v25, %v1271_v24  ;;  %v884_v47 = vadd.f32 %v1338_v29, %v1274_v27  ;;  %v1746_v29 = vld [vmem:[#allocation3_spill] sm:$0xff] }
 0x109   : > { %v1278_v49 = vpop.f32.mrf.mxu0  ;;  %v1341_v31 = vadd.f32 %v1340_v48, %v1339_v46 }
 0x10a   : > { %v1342_v50 = vpop.f32.mrf.mxu1 }
 0x10b   : > { %v1279_v51 = vpop.f32.mrf.mxu0  ;;  %v889_v44 = vadd.f32 %v1341_v31, %v1277_v30  ;;  %v1218_v31 = vld [vmem:[%s1739_s2] ss:$0 sm:$0xff] }
 0x10c   : > { %v1343_v52 = vpop.f32.mrf.mxu1  ;;  %v1280_v35 = vadd.f32 %v1279_v51, %v1278_v49 }
 0x10d   : > { %v1281_v53 = vpop.f32.mrf.mxu0  ;;  %v1344_v32 = vadd.f32 %v1343_v52, %v1342_v50 }
 0x10e   : > { %v1345_v54 = vpop.f32.mrf.mxu1 }
 0x10f   : > { %v1282_v55 = vpop.f32.mrf.mxu0 }
 0x110   : > { %v1346_v56 = vpop.f32.mrf.mxu1  ;;  %v1283_v34 = vadd.f32 %v1282_v55, %v1281_v53 }
 0x111   : > { %v1284_v57 = vpop.f32.mrf.mxu0  ;;  %v1347_v33 = vadd.f32 %v1346_v56, %v1345_v54  ;;  %v892_v56 = vadd.f32 %v1344_v32, %v1280_v35 }
 0x112   : > { %v1348_v58 = vpop.f32.mrf.mxu1 }
 0x113   : > { %v1285_v59 = vpop.f32.mrf.mxu0  ;;  %v897_v55 = vadd.f32 %v1347_v33, %v1283_v34 }
 0x114   : > { %v1349_v60 = vpop.f32.mrf.mxu1  ;;  %v1286_v46 = vadd.f32 %v1285_v59, %v1284_v57 }
 0x115   : > { %v1287_v61 = vpop.f32.mrf.mxu0  ;;  %v1350_v48 = vadd.f32 %v1349_v60, %v1348_v58 }
 0x116   : > { %v1351_v62 = vpop.f32.mrf.mxu1 }
 0x117   : > { %v1288_v63 = vpop.f32.mrf.mxu0  ;;  %v900_v59 = vadd.f32 %v1350_v48, %v1286_v46 }
 0x118   : > { %v1352_v0 = vpop.f32.mrf.mxu1  ;;  %v1289_v37 = vadd.f32 %v1288_v63, %v1287_v61 }
 0x119   : > { %v1290_v1 = vpop.f32.mrf.mxu0  ;;  %v1353_v39 = vadd.f32 %v1352_v0, %v1351_v62 }
 0x11a   : > { %v1354_v2 = vpop.f32.mrf.mxu1 }
 0x11b   : > { %v1291_v3 = vpop.f32.mrf.mxu0  ;;  %v905_v63 = vadd.f32 %v1353_v39, %v1289_v37 }
 0x11c   : > { %v1355_v4 = vpop.f32.mrf.mxu1  ;;  %v1292_v52 = vadd.f32 %v1291_v3, %v1290_v1 }
 0x11d   : > { %v1293_v5 = vpop.f32.mrf.mxu0  ;;  %v1356_v53 = vadd.f32 %v1355_v4, %v1354_v2  ;;  %v1745_v2 = vld [vmem:[#allocation2_spill] sm:$0xff] }
 0x11e   : > { %v1357_v6 = vpop.f32.mrf.mxu1 }
 0x11f   : > { %v1294_v7 = vpop.f32.mrf.mxu0  ;;  %v908_v4 = vadd.f32 %v1356_v53, %v1292_v52 }
 0x120   : > { %v1358_v8 = vpop.f32.mrf.mxu1  ;;  %v1295_v49 = vadd.f32 %v1294_v7, %v1293_v5 }
 0x121   : > { %v1296_v9 = vpop.f32.mrf.mxu0  ;;  %v1359_v51 = vadd.f32 %v1358_v8, %v1357_v6 }
 0x122   : > { %v1360_v10 = vpop.f32.mrf.mxu1 }
 0x123   : > { %v1297_v11 = vpop.f32.mrf.mxu0  ;;  %v913_v1 = vadd.f32 %v1359_v51, %v1295_v49 }
 0x124   : > { %v1361_v12 = vpop.f32.mrf.mxu1 }
 0x125   : > { %v1299_v13 = vpop.f32.mrf.mxu0 }
 0x126   : > { %v1363_v14 = vpop.f32.mrf.mxu1 }
 0x127   : > { %v1300_v15 = vpop.f32.mrf.mxu0 }
 0x128   : > { %v1364_v16 = vpop.f32.mrf.mxu1  ;;  %v1301_v38 = vadd.f32 %v1300_v15, %v1299_v13  ;;  %v1362_v15 = vadd.f32 %v1361_v12, %v1360_v10 }
 0x129   : > { %v1302_v17 = vpop.f32.mrf.mxu0  ;;  %v1365_v40 = vadd.f32 %v1364_v16, %v1363_v14  ;;  %v1298_v14 = vadd.f32 %v1297_v11, %v1296_v9  ;;  %v1744_v16 = vld [vmem:[#allocation4_spill] sm:$0xff] }
 0x12a   : > { %v1366_v18 = vpop.f32.mrf.mxu1 }
 0x12b   : > { %v1303_v19 = vpop.f32.mrf.mxu0  ;;  %v921_v13 = vadd.f32 %v1365_v40, %v1301_v38 }
 0x12c   : > { %v1367_v20 = vpop.f32.mrf.mxu1  ;;  %v1304_v61 = vadd.f32 %v1303_v19, %v1302_v17 }
 0x12d   : > { %v1391_v26 = vpop.f32.mrf.mxu0  ;;  %v1368_v62 = vadd.f32 %v1367_v20, %v1366_v18 }
 0x12e   : > { %v1399_v28 = vpop.f32.mrf.mxu1  ;;  %v970_v22 = vadd.f32 %v1391_v26, %v1744_v16 }
 0x12f   : > { %v961_v21 = vpop.f32.mrf.mxu0  ;;  %v1002_v58 = vadd.f32 %v1399_v28, %v905_v63  ;;  %v924_v10 = vadd.f32 %v1368_v62, %v1304_v61  ;;  %v916_v28 = vadd.f32 %v1362_v15, %v1298_v14 }
 0x130   : > { %v993_v36 = vpop.f32.mrf.mxu1  ;;  %v962_v3 = vadd.f32 %v961_v21, %v1745_v2 }
 0x131   : > { %v1392_v41 = vpop.f32.mrf.mxu0  ;;  %v994_v8 = vadd.f32 %v993_v36, %v897_v55 }
 0x132   : > { %v1400_v42 = vpop.f32.mrf.mxu1  ;;  %v973_v11 = vadd.f32 %v1392_v41, %v876_v43 }
 0x133   : > { %v964_v50 = vpop.f32.mrf.mxu0  ;;  %v1005_v24 = vadd.f32 %v1400_v42, %v908_v4 }
 0x134   : > { %v996_v54 = vpop.f32.mrf.mxu1  ;;  %v965_v30 = vadd.f32 %v964_v50, %v1746_v29 }
 0x135   : > { %v1395_v0 = vpop.f32.mrf.mxu0  ;;  %v997_v36 = vadd.f32 %v996_v54, %v900_v59 }
 0x136   : > { %v986_v23 = vadd.f32 %v1395_v0, %v889_v44  ;;  %v1403_v57 = vpop.f32.mrf.mxu1 }
 0x137   : > { %v1018_v60 = vadd.f32 %v1403_v57, %v921_v13  ;;  %v977_v5 = vpop.f32.mrf.mxu0 }
 0x138   : > { %v1026_v35 = vmax.f32 %v970_v22, %v986_v23  ;;  %v978_v6 = vadd.f32 %v977_v5, %v881_v45  ;;  %v1009_v7 = vpop.f32.mrf.mxu1 }
 0x139   : > { %v1030_v17 = vmax.f32 %v1002_v58, %v1018_v60  ;;  %v1010_v18 = vadd.f32 %v1009_v7, %v913_v1  ;;  %v1396_v9 = vpop.f32.mrf.mxu0 }
 0x13a   : > { %v1024_v12 = vmax.f32 %v962_v3, %v978_v6  ;;  %v989_v19 = vadd.f32 %v1396_v9, %v892_v56  ;;  %v1404_v20 = vpop.f32.mrf.mxu1 }
 0x13b   : > { %v1034_v25 = vmax.f32 %v1026_v35, %v1030_v17  ;;  %v1028_v26 = vmax.f32 %v994_v8, %v1010_v18  ;;  %v1021_v27 = vadd.f32 %v1404_v20, %v924_v10  ;;  %v980_v21 = vpop.f32.mrf.mxu0 }
 0x13c   : > { %v1027_v32 = vmax.f32 %v973_v11, %v989_v19  ;;  %v981_v34 = vadd.f32 %v980_v21, %v884_v47  ;;  %v1012_v33 = vpop.f32.mrf.mxu1 }
 0x13d   : > { %v1032_v37 = vmax.f32 %v1024_v12, %v1028_v26  ;;  %v1031_v39 = vmax.f32 %v1005_v24, %v1021_v27  ;;  %v1013_v38 = vadd.f32 %v1012_v33, %v916_v28  ;;  %v1045_v41 = vadd.f32 %v1218_v31, %v1034_v25 }
 0x13e   : > { %v1025_v40 = vmax.f32 %v965_v30, %v981_v34 }
 0x13f   : > { %v1035_v43 = vmax.f32 %v1027_v32, %v1031_v39  ;;  %v1029_v42 = vmax.f32 %v997_v36, %v1013_v38  ;;  %v1043_v44 = vadd.f32 %v1218_v31, %v1032_v37  ;;  %v1049_v48 = vmax.f32 %v1045_v41, 0.0 }
 0x141   : > { %v1046_v45 = vadd.f32 %v1218_v31, %v1035_v43  ;;  %v1033_v46 = vmax.f32 %v1025_v40, %v1029_v42  ;;  %v1047_v47 = vmax.f32 %v1043_v44, 0.0 }
 0x143   : > { %v1050_v49 = vmax.f32 %v1046_v45, 0.0  ;;  %v1044_v51 = vadd.f32 %v1218_v31, %v1033_v46 }
 0x145   : > { %v1238_v50 = vpack.c.bf16 %v1050_v49, %v1049_v48  ;;  %v1048_v52 = vmax.f32 %v1044_v51, 0.0 }
 0x147   : > { %1240 = vst [vmem:[%s170_s20 + $0x8] sm:$0xff] %v1238_v50   ;;  %v1233_v53 = vpack.c.bf16 %v1048_v52, %v1047_v47 }
 0x149   : > { %1234 = vst [vmem:[%s170_s20] sm:$0xff] %v1233_v53  }
 0x14a PF: > { %s13_s12 = sadd.s32 1, %s1520_s12  }
 0x14b   : > { %p10_p4 = scmp.ge.s32.totalorder %s13_s12, 4  }
 0x14d   :  { %12 = sbr.rel (!%p10_p4) target bundleno = 1 (0x1), region = 62 }

// kernel: cnn_min_forward.6
= control target key start
LH: loop header
LB: loop body
LE: loop exit
PB: predicated region body
PF: predicated region fallthrough
CT: control target
= control target key end

     0   :  { %s1971_s12 = smov 0   ;;  %s2451_s0 = inlined_call_operand.vmem [shape: bf16[2,32,1152], index: 0, kind: input, shape index: {}]   ;;  %s2452_s1 = inlined_call_operand.vmem [shape: bf16[1152,256], index: 1, kind: input, shape index: {}]   ;;  %s2453_s2 = inlined_call_operand.vmem [shape: f32[1,256], index: 2, kind: input, shape index: {}]   ;;  %s2454_s3 = inlined_call_operand.vmem [shape: bf16[2,8,256], index: 3, kind: output, shape index: {}]  }
   0x1 LB: > { %s1499_s13 = sadd.s32 4294967295, %s1948_s12   ;;  %p1503_p0 = scmp.ge.s32.totalorder %s1948_s12, 1  ;;  %s1948_s12 = sphi %s1971_s12, %s13_s12  }
   0x2   : > { %p137_p1 = scmp.lt.s32.totalorder %s1948_s12, 3 }
   0x4   : > { %p138_p2 = pnand %p1503_p0, %p137_p1 }
   0x5   : > { %p161_p3 = scmp.lt.s32.totalorder (!%p138_p2), %s1499_s13, 1 }
   0x6   : > { %141 = sbr.rel (%p138_p2) target bundleno = 385 (0x181), region = 32 }
   0xb   : > { %v1700_v0 = vld [vmem:[%s2452_s1 + $0x74] ss:$8 sps:$4 sm:$0xff]   ;;  %v1704_v2 = vld [vmem:[%s2452_s1 + $0x70] ss:$8 sps:$4 sm:$0xff]   ;;  %v1706_v4 = vld [vmem:[%s2452_s1 + $0x64] ss:$8 sps:$4 sm:$0xff]  }
   0xc   : > { %v1702_v1 = vld [vmem:[%s2452_s1 + $0x174] ss:$8 sps:$4 sm:$0xff]   ;;  %1148 = vmatprep.subr.bf16.mxu0 %v1700_v0  ;;  %v1705_v3 = vld [vmem:[%s2452_s1 + $0x170] ss:$8 sps:$4 sm:$0xff]   ;;  %v1708_v5 = vld [vmem:[%s2452_s1 + $0x164] ss:$8 sps:$4 sm:$0xff]  }
   0xd   : > { %1201 = vmatprep.subr.bf16.mxu1 %v1702_v1  ;;  %1149 = vmatpush1.bf16.msra.mxu0 %v1704_v2  ;;  %v1710_v6 = vld [vmem:[%s2452_s1 + $0x60] ss:$8 sps:$4 sm:$0xff]   ;;  %v1712_v8 = vld [vmem:[%s2452_s1 + $0x54] ss:$8 sps:$4 sm:$0xff]   ;;  %v1716_v10 = vld [vmem:[%s2452_s1 + $0x50] ss:$8 sps:$4 sm:$0xff]  }
   0xe   : > { %1202 = vmatpush1.bf16.msra.mxu1 %v1705_v3  ;;  %1150 = vmatprep.subr.bf16.mxu0 %v1706_v4  ;;  %v1711_v7 = vld [vmem:[%s2452_s1 + $0x160] ss:$8 sps:$4 sm:$0xff]   ;;  %v1714_v9 = vld [vmem:[%s2452_s1 + $0x154] ss:$8 sps:$4 sm:$0xff]   ;;  %v1717_v11 = vld [vmem:[%s2452_s1 + $0x150] ss:$8 sps:$4 sm:$0xff]  }
   0xf   : > { %1203 = vmatprep.subr.bf16.mxu1 %v1708_v5  ;;  %v1718_v12 = vld [vmem:[%s2452_s1 + $0x44] ss:$8 sps:$4 sm:$0xff]   ;;  %v1722_v14 = vld [vmem:[%s2452_s1 + $0x40] ss:$8 sps:$4 sm:$0xff]   ;;  %v1724_v16 = vld [vmem:[%s2452_s1 + $0x34] ss:$8 sps:$4 sm:$0xff]  }
  0x10   : > { %v1720_v13 = vld [vmem:[%s2452_s1 + $0x144] ss:$8 sps:$4 sm:$0xff]   ;;  %v1723_v15 = vld [vmem:[%s2452_s1 + $0x140] ss:$8 sps:$4 sm:$0xff]   ;;  %v1726_v17 = vld [vmem:[%s2452_s1 + $0x134] ss:$8 sps:$4 sm:$0xff]  }
  0x11   : > { %1151 = vmatpush1.bf16.msra.mxu0 %v1710_v6  ;;  %v1728_v18 = vld [vmem:[%s2452_s1 + $0x30] ss:$8 sps:$4 sm:$0xff]   ;;  %v1730_v20 = vld [vmem:[%s2452_s1 + $0x24] ss:$8 sps:$4 sm:$0xff]   ;;  %v1734_v22 = vld [vmem:[%s2452_s1 + $0x20] ss:$8 sps:$4 sm:$0xff]  }
  0x12   : > { %1204 = vmatpush1.bf16.msra.mxu1 %v1711_v7  ;;  %1152 = vmatprep.subr.bf16.mxu0 %v1712_v8  ;;  %v1729_v19 = vld [vmem:[%s2452_s1 + $0x130] ss:$8 sps:$4 sm:$0xff]   ;;  %v1732_v21 = vld [vmem:[%s2452_s1 + $0x124] ss:$8 sps:$4 sm:$0xff]   ;;  %v1735_v23 = vld [vmem:[%s2452_s1 + $0x120] ss:$8 sps:$4 sm:$0xff]  }
  0x13   : > { %1205 = vmatprep.subr.bf16.mxu1 %v1714_v9  ;;  %v1736_v24 = vld [vmem:[%s2452_s1 + $0x14] ss:$8 sps:$4 sm:$0xff]   ;;  %v1740_v26 = vld [vmem:[%s2452_s1 + $0x10] ss:$8 sps:$4 sm:$0xff]   ;;  %v1742_v28 = vld [vmem:[%s2452_s1 + $0x4] ss:$8 sps:$4 sm:$0xff]  }
  0x14   : > { %v1738_v25 = vld [vmem:[%s2452_s1 + $0x114] ss:$8 sps:$4 sm:$0xff]   ;;  %v1741_v27 = vld [vmem:[%s2452_s1 + $0x110] ss:$8 sps:$4 sm:$0xff]   ;;  %v1744_v29 = vld [vmem:[%s2452_s1 + $0x104] ss:$8 sps:$4 sm:$0xff]  }
  0x15   : > { %1153 = vmatpush1.bf16.msra.mxu0 %v1716_v10  ;;  %v1746_v30 = vld [vmem:[%s2452_s1] ss:$8 sps:$4 sm:$0xff]   ;;  %v1748_v32 = vld [vmem:[%s2452_s1 + $0xf4] ss:$8 sps:$4 sm:$0xff]   ;;  %v1752_v34 = vld [vmem:[%s2452_s1 + $0xf0] ss:$8 sps:$4 sm:$0xff]  }
  0x16   : > { %1206 = vmatpush1.bf16.msra.mxu1 %v1717_v11  ;;  %1154 = vmatprep.subr.bf16.mxu0 %v1718_v12  ;;  %v1747_v31 = vld [vmem:[%s2452_s1 + $0x100] ss:$8 sps:$4 sm:$0xff]   ;;  %v1750_v33 = vld [vmem:[%s2452_s1 + $0x1f4] ss:$8 sps:$4 sm:$0xff]   ;;  %v1753_v35 = vld [vmem:[%s2452_s1 + $0x1f0] ss:$8 sps:$4 sm:$0xff]  }
  0x17   : > { %1207 = vmatprep.subr.bf16.mxu1 %v1720_v13  ;;  %v1754_v36 = vld [vmem:[%s2452_s1 + $0xe4] ss:$8 sps:$4 sm:$0xff]   ;;  %s2456_s13 = smov (!%p161_p3, %s1499_s13), 1  ;;  %v1758_v38 = vld [vmem:[%s2452_s1 + $0xe0] ss:$8 sps:$4 sm:$0xff]  }
  0x18   : > { %v1756_v37 = vld [vmem:[%s2452_s1 + $0x1e4] ss:$8 sps:$4 sm:$0xff]   ;;  %v1759_v39 = vld [vmem:[%s2452_s1 + $0x1e0] ss:$8 sps:$4 sm:$0xff]   ;;  %v1760_v40 = vld [vmem:[%s2452_s1 + $0xd4] ss:$8 sps:$4 sm:$0xff]  }
  0x19   : > { %1155 = vmatpush1.bf16.msra.mxu0 %v1722_v14  ;;  %s1690_s21 = smul.u32 144, %s2456_s13  ;;  %v1762_v41 = vld [vmem:[%s2452_s1 + $0x1d4] ss:$8 sps:$4 sm:$0xff]   ;;  %v1764_v42 = vld [vmem:[%s2452_s1 + $0xd0] ss:$8 sps:$4 sm:$0xff]   ;;  %s1672_s15 = sshll.u32 %s2456_s13, 3 }
  0x1a   : > { %1208 = vmatpush1.bf16.msra.mxu1 %v1723_v15  ;;  %1156 = vmatprep.subr.bf16.mxu0 %v1724_v16  ;;  %v1765_v43 = vld [vmem:[%s2452_s1 + $0x1d0] ss:$8 sps:$4 sm:$0xff]   ;;  %v1766_v44 = vld [vmem:[%s2452_s1 + $0xc4] ss:$8 sps:$4 sm:$0xff]   ;;  %v1770_v46 = vld [vmem:[%s2452_s1 + $0xc0] ss:$8 sps:$4 sm:$0xff]   ;;  %s170_s18 = scalar_lea.vmem %s2454_s3, %s1672_s15 }
  0x1b   : > { %1209 = vmatprep.subr.bf16.mxu1 %v1726_v17  ;;  %s2124_s5 = scalar_lea.vmem %s2451_s0, %s1690_s21  ;;  %v1768_v45 = vld [vmem:[%s2452_s1 + $0x1c4] ss:$8 sps:$4 sm:$0xff]   ;;  %v1771_v47 = vld [vmem:[%s2452_s1 + $0x1c0] ss:$8 sps:$4 sm:$0xff]   ;;  %v1772_v48 = vld [vmem:[%s2452_s1 + $0xb4] ss:$8 sps:$4 sm:$0xff]  }
  0x1c   : > { %v1798_v49 = vld [vmem:[%s2124_s5 + $0x4] ss:$36 sps:$4 sm:$0xff]   ;;  %v1774_v50 = vld [vmem:[%s2452_s1 + $0x1b4] ss:$8 sps:$4 sm:$0xff]   ;;  %v1801_v51 = vld [vmem:[%s2124_s5 + $0xc] ss:$36 sps:$4 sm:$0xff]  }
  0x1d   : > { %1157 = vmatpush1.bf16.msra.mxu0 %v1728_v18  ;;  %1180 = vmatprep.mubr.bf16.mxu0 %v1798_v49  ;;  %v1776_v52 = vld [vmem:[%s2452_s1 + $0xb0] ss:$8 sps:$4 sm:$0xff]   ;;  %v1778_v54 = vld [vmem:[%s2452_s1 + $0xa4] ss:$8 sps:$4 sm:$0xff]   ;;  %v1782_v56 = vld [vmem:[%s2452_s1 + $0xa0] ss:$8 sps:$4 sm:$0xff]  }
  0x1e   : > { %1210 = vmatpush1.bf16.msra.mxu1 %v1729_v19  ;;  %1158 = vmatprep.subr.bf16.mxu0 %v1730_v20  ;;  %v1777_v53 = vld [vmem:[%s2452_s1 + $0x1b0] ss:$8 sps:$4 sm:$0xff]   ;;  %v1780_v55 = vld [vmem:[%s2452_s1 + $0x1a4] ss:$8 sps:$4 sm:$0xff]   ;;  %v1783_v57 = vld [vmem:[%s2452_s1 + $0x1a0] ss:$8 sps:$4 sm:$0xff]  }
  0x1f   : > { %1211 = vmatprep.subr.bf16.mxu1 %v1732_v21  ;;  %1233 = vmatprep.mubr.bf16.mxu1 %v1801_v51  ;;  %v1784_v58 = vld [vmem:[%s2452_s1 + $0x94] ss:$8 sps:$4 sm:$0xff]   ;;  %v1788_v60 = vld [vmem:[%s2452_s1 + $0x90] ss:$8 sps:$4 sm:$0xff]   ;;  %v1790_v62 = vld [vmem:[%s2452_s1 + $0x84] ss:$8 sps:$4 sm:$0xff]  }
  0x20   : > { %v1786_v59 = vld [vmem:[%s2452_s1 + $0x194] ss:$8 sps:$4 sm:$0xff]   ;;  %v1789_v61 = vld [vmem:[%s2452_s1 + $0x190] ss:$8 sps:$4 sm:$0xff]   ;;  %v1792_v63 = vld [vmem:[%s2452_s1 + $0x184] ss:$8 sps:$4 sm:$0xff]  }
  0x21   : > { %1159 = vmatpush1.bf16.msra.mxu0 %v1734_v22  ;;  %v1794_v0 = vld [vmem:[%s2452_s1 + $0x80] ss:$8 sps:$4 sm:$0xff]   ;;  %v1804_v2 = vld [vmem:[%s2452_s1 + $0x274] ss:$8 sps:$4 sm:$0xff]   ;;  %v1802_v6 = vld [vmem:[%s2452_s1 + $0x270] ss:$8 sps:$4 sm:$0xff]  }
  0x22   : > { %1212 = vmatpush1.bf16.msra.mxu1 %v1735_v23  ;;  %1160 = vmatprep.subr.bf16.mxu0 %v1736_v24  ;;  %v1795_v1 = vld [vmem:[%s2452_s1 + $0x180] ss:$8 sps:$4 sm:$0xff]   ;;  %v1807_v3 = vld [vmem:[%s2452_s1 + $0x374] ss:$8 sps:$4 sm:$0xff]   ;;  %v1805_v7 = vld [vmem:[%s2452_s1 + $0x370] ss:$8 sps:$4 sm:$0xff]  }
  0x23   : > { %1213 = vmatprep.subr.bf16.mxu1 %v1738_v25  ;;  %v1796_v4 = vld [vmem:[%s2124_s5] ss:$36 sps:$4 sm:$0xff]   ;;  %v1799_v5 = vld [vmem:[%s2124_s5 + $0x8] ss:$36 sps:$4 sm:$0xff]   ;;  %v1816_v12 = vld [vmem:[%s2452_s1 + $0x254] ss:$8 sps:$4 sm:$0xff]  }
  0x24   : > { %v1810_v8 = vld [vmem:[%s2452_s1 + $0x264] ss:$8 sps:$4 sm:$0xff]   ;;  %v1808_v10 = vld [vmem:[%s2452_s1 + $0x260] ss:$8 sps:$4 sm:$0xff]   ;;  %v1819_v13 = vld [vmem:[%s2452_s1 + $0x354] ss:$8 sps:$4 sm:$0xff]  }
  0x25   : > { %1161 = vmatpush1.bf16.msra.mxu0 %v1740_v26  ;;  %v1813_v9 = vld [vmem:[%s2452_s1 + $0x364] ss:$8 sps:$4 sm:$0xff]   ;;  %v1811_v11 = vld [vmem:[%s2452_s1 + $0x360] ss:$8 sps:$4 sm:$0xff]   ;;  %v1814_v14 = vld [vmem:[%s2452_s1 + $0x250] ss:$8 sps:$4 sm:$0xff]  }
  0x26   : > { %1214 = vmatpush1.bf16.msra.mxu1 %v1741_v27  ;;  %1162 = vmatprep.subr.bf16.mxu0 %v1742_v28  ;;  %v1817_v15 = vld [vmem:[%s2452_s1 + $0x350] ss:$8 sps:$4 sm:$0xff]   ;;  %v1822_v16 = vld [vmem:[%s2452_s1 + $0x244] ss:$8 sps:$4 sm:$0xff]   ;;  %v1820_v18 = vld [vmem:[%s2452_s1 + $0x240] ss:$8 sps:$4 sm:$0xff]  }
  0x27   : > { %1215 = vmatprep.subr.bf16.mxu1 %v1744_v29  ;;  %v1825_v17 = vld [vmem:[%s2452_s1 + $0x344] ss:$8 sps:$4 sm:$0xff]   ;;  %v1823_v19 = vld [vmem:[%s2452_s1 + $0x340] ss:$8 sps:$4 sm:$0xff]   ;;  %v1828_v20 = vld [vmem:[%s2452_s1 + $0x234] ss:$8 sps:$4 sm:$0xff]  }
  0x28   : > { %v1831_v21 = vld [vmem:[%s2452_s1 + $0x334] ss:$8 sps:$4 sm:$0xff]   ;;  %v1826_v22 = vld [vmem:[%s2452_s1 + $0x230] ss:$8 sps:$4 sm:$0xff]   ;;  %v1834_v24 = vld [vmem:[%s2452_s1 + $0x224] ss:$8 sps:$4 sm:$0xff]  }
  0x29   : > { %1163 = vmatpush1.bf16.msra.mxu0 %v1746_v30  ;;  %v1829_v23 = vld [vmem:[%s2452_s1 + $0x330] ss:$8 sps:$4 sm:$0xff]   ;;  %v1837_v25 = vld [vmem:[%s2452_s1 + $0x324] ss:$8 sps:$4 sm:$0xff]   ;;  %v1832_v30 = vld [vmem:[%s2452_s1 + $0x220] ss:$8 sps:$4 sm:$0xff]  }
  0x2a   : > { %1216 = vmatpush1.bf16.msra.mxu1 %v1747_v31  ;;  %1164 = vmatprep.subr.bf16.mxu0 %v1748_v32  ;;  %v1880_v26 = vld [vmem:[%s2124_s5 + $0x4c] ss:$36 sps:$4 sm:$0xff]   ;;  %v1882_v27 = vld [vmem:[%s2124_s5 + $0x54] ss:$36 sps:$4 sm:$0xff]   ;;  %v1835_v31 = vld [vmem:[%s2452_s1 + $0x320] ss:$8 sps:$4 sm:$0xff]  }
  0x2b   : > { %1217 = vmatprep.subr.bf16.mxu1 %v1750_v33  ;;  %v1884_v28 = vld [vmem:[%s2124_s5 + $0x48] ss:$36 sps:$4 sm:$0xff]   ;;  %v1885_v29 = vld [vmem:[%s2124_s5 + $0x50] ss:$36 sps:$4 sm:$0xff]  }
  0x2c   : > { %v1840_v32 = vld [vmem:[%s2452_s1 + $0x214] ss:$8 sps:$4 sm:$0xff]   ;;  %v1859_v49 = vld [vmem:[%s2452_s1 + $0x3e0] ss:$8 sps:$4 sm:$0xff]  }
  0x2d   : > { %1165 = vmatpush2.bf16.msra.mxu0 %v1752_v34  ;;  %v1843_v33 = vld [vmem:[%s2452_s1 + $0x314] ss:$8 sps:$4 sm:$0xff]   ;;  %v1838_v34 = vld [vmem:[%s2452_s1 + $0x210] ss:$8 sps:$4 sm:$0xff]  }
  0x2e   : > { %1218 = vmatpush2.bf16.msra.mxu1 %v1753_v35  ;;  %1166 = vmatprep.subr.bf16.mxu0 %v1754_v36  ;;  %v1841_v35 = vld [vmem:[%s2452_s1 + $0x310] ss:$8 sps:$4 sm:$0xff]   ;;  %v1846_v36 = vld [vmem:[%s2452_s1 + $0x204] ss:$8 sps:$4 sm:$0xff]   ;;  %v1867_v51 = vld [vmem:[%s2452_s1 + $0x3d4] ss:$8 sps:$4 sm:$0xff]  }
  0x2f   : > { %1219 = vmatprep.subr.bf16.mxu1 %v1756_v37  ;;  %v1849_v37 = vld [vmem:[%s2452_s1 + $0x304] ss:$8 sps:$4 sm:$0xff]  }
  0x31   : > { %1167 = vmatpush2.bf16.msra.mxu0 %v1758_v38  ;;  %v1844_v38 = vld [vmem:[%s2452_s1 + $0x200] ss:$8 sps:$4 sm:$0xff]  }
  0x32   : > { %1220 = vmatpush2.bf16.msra.mxu1 %v1759_v39  ;;  %1168 = vmatprep.subr.bf16.mxu0 %v1760_v40  ;;  %v1847_v39 = vld [vmem:[%s2452_s1 + $0x300] ss:$8 sps:$4 sm:$0xff]   ;;  %v1852_v40 = vld [vmem:[%s2452_s1 + $0x2f4] ss:$8 sps:$4 sm:$0xff]  }
  0x33   : > { %1221 = vmatprep.subr.bf16.mxu1 %v1762_v41  ;;  %v1906_v41 = vld [vmem:[%s2124_s5 + $0x14] ss:$36 sps:$4 sm:$0xff]  }
  0x35   : > { %1169 = vmatpush2.bf16.msra.mxu0 %v1764_v42  ;;  %v1855_v42 = vld [vmem:[%s2452_s1 + $0x3f4] ss:$8 sps:$4 sm:$0xff]  }
  0x36   : > { %1222 = vmatpush2.bf16.msra.mxu1 %v1765_v43  ;;  %1170 = vmatprep.subr.bf16.mxu0 %v1766_v44  ;;  %v1909_v43 = vld [vmem:[%s2124_s5 + $0x1c] ss:$36 sps:$4 sm:$0xff]   ;;  %v1850_v44 = vld [vmem:[%s2452_s1 + $0x2f0] ss:$8 sps:$4 sm:$0xff]  }
  0x37   : > { %1223 = vmatprep.subr.bf16.mxu1 %v1768_v45  ;;  %v1853_v45 = vld [vmem:[%s2452_s1 + $0x3f0] ss:$8 sps:$4 sm:$0xff]  }
  0x39   : > { %1171 = vmatpush2.bf16.msra.mxu0 %v1770_v46  ;;  %v1858_v46 = vld [vmem:[%s2452_s1 + $0x2e4] ss:$8 sps:$4 sm:$0xff]  }
  0x3a   : > { %1224 = vmatpush2.bf16.msra.mxu1 %v1771_v47  ;;  %1172 = vmatprep.subr.bf16.mxu0 %v1772_v48  ;;  %v1861_v47 = vld [vmem:[%s2452_s1 + $0x3e4] ss:$8 sps:$4 sm:$0xff]   ;;  %v1856_v48 = vld [vmem:[%s2452_s1 + $0x2e0] ss:$8 sps:$4 sm:$0xff]  }
  0x3b   : > { %1225 = vmatprep.subr.bf16.mxu1 %v1774_v50  ;;  %v1864_v50 = vld [vmem:[%s2452_s1 + $0x2d4] ss:$8 sps:$4 sm:$0xff]  }
  0x3d   : > { %1173 = vmatpush2.bf16.msra.mxu0 %v1776_v52  ;;  %v1862_v52 = vld [vmem:[%s2452_s1 + $0x2d0] ss:$8 sps:$4 sm:$0xff]  }
  0x3e   : > { %1226 = vmatpush2.bf16.msra.mxu1 %v1777_v53  ;;  %1174 = vmatprep.subr.bf16.mxu0 %v1778_v54  ;;  %v1865_v53 = vld [vmem:[%s2452_s1 + $0x3d0] ss:$8 sps:$4 sm:$0xff]   ;;  %v1870_v54 = vld [vmem:[%s2452_s1 + $0x2c4] ss:$8 sps:$4 sm:$0xff]  }
  0x3f   : > { %1227 = vmatprep.subr.bf16.mxu1 %v1780_v55  ;;  %v1873_v55 = vld [vmem:[%s2452_s1 + $0x3c4] ss:$8 sps:$4 sm:$0xff]  }
  0x41   : > { %1175 = vmatpush2.bf16.msra.mxu0 %v1782_v56  ;;  %v1868_v56 = vld [vmem:[%s2452_s1 + $0x2c0] ss:$8 sps:$4 sm:$0xff]  }
  0x42   : > { %1228 = vmatpush2.bf16.msra.mxu1 %v1783_v57  ;;  %1176 = vmatprep.subr.bf16.mxu0 %v1784_v58  ;;  %v1871_v57 = vld [vmem:[%s2452_s1 + $0x3c0] ss:$8 sps:$4 sm:$0xff]   ;;  %v1876_v58 = vld [vmem:[%s2452_s1 + $0x2b4] ss:$8 sps:$4 sm:$0xff]  }
  0x43   : > { %1229 = vmatprep.subr.bf16.mxu1 %v1786_v59  ;;  %v1879_v59 = vld [vmem:[%s2452_s1 + $0x3b4] ss:$8 sps:$4 sm:$0xff]  }
  0x45   : > { %1177 = vmatpush2.bf16.msra.mxu0 %v1788_v60  ;;  %v1874_v60 = vld [vmem:[%s2452_s1 + $0x2b0] ss:$8 sps:$4 sm:$0xff]  }
  0x46   : > { %1230 = vmatpush2.bf16.msra.mxu1 %v1789_v61  ;;  %1178 = vmatprep.subr.bf16.mxu0 %v1790_v62  ;;  %v1877_v61 = vld [vmem:[%s2452_s1 + $0x3b0] ss:$8 sps:$4 sm:$0xff]   ;;  %v1888_v62 = vld [vmem:[%s2452_s1 + $0x2a4] ss:$8 sps:$4 sm:$0xff]  }
  0x47   : > { %1231 = vmatprep.subr.bf16.mxu1 %v1792_v63  ;;  %v1891_v63 = vld [vmem:[%s2452_s1 + $0x3a4] ss:$8 sps:$4 sm:$0xff]  }
  0x49   : > { %1179 = vmatpush2.bf16.msra.mxu0 %v1794_v0  ;;  %v1886_v0 = vld [vmem:[%s2452_s1 + $0x2a0] ss:$8 sps:$4 sm:$0xff]  }
  0x4a   : > { %1232 = vmatpush2.bf16.msra.mxu1 %v1795_v1  ;;  %1254 = vmatprep.subr.bf16.mxu0 %v1804_v2  ;;  %v1889_v1 = vld [vmem:[%s2452_s1 + $0x3a0] ss:$8 sps:$4 sm:$0xff]   ;;  %v1894_v2 = vld [vmem:[%s2452_s1 + $0x294] ss:$8 sps:$4 sm:$0xff]  }
  0x4b   : > { %1307 = vmatprep.subr.bf16.mxu1 %v1807_v3  ;;  %v1897_v3 = vld [vmem:[%s2452_s1 + $0x394] ss:$8 sps:$4 sm:$0xff]  }
  0x4c   : > { %1181 = vmatmul.mubr.bf16.vlgmr.msra.gmra.mxu0 %v1796_v4  ;;  %v1892_v4 = vld [vmem:[%s2452_s1 + $0x290] ss:$8 sps:$4 sm:$0xff]  }
  0x4d   : > { %1234 = vmatmul.mubr.bf16.vlgmr.msra.gmra.mxu1 %v1799_v5  ;;  %1255 = vmatpush1.bf16.msra.mxu0 %v1802_v6  ;;  %v1895_v5 = vld [vmem:[%s2452_s1 + $0x390] ss:$8 sps:$4 sm:$0xff]   ;;  %v1900_v6 = vld [vmem:[%s2452_s1 + $0x284] ss:$8 sps:$4 sm:$0xff]  }
  0x4e   : > { %1308 = vmatpush1.bf16.msra.mxu1 %v1805_v7  ;;  %1256 = vmatprep.subr.bf16.mxu0 %v1810_v8  ;;  %v1903_v7 = vld [vmem:[%s2452_s1 + $0x384] ss:$8 sps:$4 sm:$0xff]   ;;  %v1898_v8 = vld [vmem:[%s2452_s1 + $0x280] ss:$8 sps:$4 sm:$0xff]  }
  0x4f   : > { %1309 = vmatprep.subr.bf16.mxu1 %v1813_v9  ;;  %1190 = vmatprep.mubr.bf16.mxu0 %v1880_v26  ;;  %v1901_v9 = vld [vmem:[%s2452_s1 + $0x380] ss:$8 sps:$4 sm:$0xff]   ;;  %v1928_v26 = vld [vmem:[%s2452_s1 + $0x430] ss:$8 sps:$4 sm:$0xff]  }
  0x50   : > { %1243 = vmatprep.mubr.bf16.mxu1 %v1882_v27  ;;  %v1933_v27 = vld [vmem:[%s2452_s1 + $0x424] ss:$8 sps:$4 sm:$0xff]  }
  0x51   : > { %1257 = vmatpush1.bf16.msra.mxu0 %v1808_v10  ;;  %v1912_v10 = vld [vmem:[%s2452_s1 + $0x474] ss:$8 sps:$4 sm:$0xff]  }
  0x52   : > { %1310 = vmatpush1.bf16.msra.mxu1 %v1811_v11  ;;  %1258 = vmatprep.subr.bf16.mxu0 %v1816_v12  ;;  %v1904_v11 = vld [vmem:[%s2124_s5 + $0x10] ss:$36 sps:$4 sm:$0xff]   ;;  %v1907_v12 = vld [vmem:[%s2124_s5 + $0x18] ss:$36 sps:$4 sm:$0xff]  }
  0x53   : > { %1311 = vmatprep.subr.bf16.mxu1 %v1819_v13  ;;  %v1910_v13 = vld [vmem:[%s2452_s1 + $0x470] ss:$8 sps:$4 sm:$0xff]  }
  0x54   : > { %1191 = vmatmul.mubr.bf16.gmra.mxu0 %v1884_v28  ;;  %v1931_v28 = vld [vmem:[%s2452_s1 + $0x420] ss:$8 sps:$4 sm:$0xff]  }
  0x55   : > { %1259 = vmatpush1.bf16.msra.mxu0 %v1814_v14  ;;  %1244 = vmatmul.mubr.bf16.gmra.mxu1 %v1885_v29  ;;  %v1915_v14 = vld [vmem:[%s2452_s1 + $0x464] ss:$8 sps:$4 sm:$0xff]   ;;  %v1936_v29 = vld [vmem:[%s2452_s1 + $0x414] ss:$8 sps:$4 sm:$0xff]  }
  0x56   : > { %1312 = vmatpush1.bf16.msra.mxu1 %v1817_v15  ;;  %1260 = vmatprep.subr.bf16.mxu0 %v1822_v16  ;;  %v1916_v15 = vld [vmem:[%s2124_s5 + $0x5c] ss:$36 sps:$4 sm:$0xff]   ;;  %v1922_v16 = vld [vmem:[%s2124_s5 + $0x64] ss:$36 sps:$4 sm:$0xff]  }
  0x57   : > { %1313 = vmatprep.subr.bf16.mxu1 %v1825_v17  ;;  %1286 = vmatprep.mubr.bf16.mxu0 %v1906_v41  ;;  %v1913_v17 = vld [vmem:[%s2452_s1 + $0x460] ss:$8 sps:$4 sm:$0xff]  }
  0x58   : > { %1339 = vmatprep.mubr.bf16.mxu1 %v1909_v43 }
  0x59   : > { %1261 = vmatpush1.bf16.msra.mxu0 %v1820_v18  ;;  %v1921_v18 = vld [vmem:[%s2452_s1 + $0x454] ss:$8 sps:$4 sm:$0xff]  }
  0x5a   : > { %1314 = vmatpush1.bf16.msra.mxu1 %v1823_v19  ;;  %1262 = vmatprep.subr.bf16.mxu0 %v1828_v20  ;;  %v1918_v19 = vld [vmem:[%s2124_s5 + $0x58] ss:$36 sps:$4 sm:$0xff]   ;;  %v1924_v20 = vld [vmem:[%s2124_s5 + $0x60] ss:$36 sps:$4 sm:$0xff]  }
  0x5b   : > { %1315 = vmatprep.subr.bf16.mxu1 %v1831_v21  ;;  %v1919_v21 = vld [vmem:[%s2452_s1 + $0x450] ss:$8 sps:$4 sm:$0xff]  }
  0x5d   : > { %1263 = vmatpush1.bf16.msra.mxu0 %v1826_v22  ;;  %v1927_v22 = vld [vmem:[%s2452_s1 + $0x444] ss:$8 sps:$4 sm:$0xff]  }
  0x5e   : > { %1316 = vmatpush1.bf16.msra.mxu1 %v1829_v23  ;;  %1264 = vmatprep.subr.bf16.mxu0 %v1834_v24  ;;  %v1925_v23 = vld [vmem:[%s2452_s1 + $0x440] ss:$8 sps:$4 sm:$0xff]   ;;  %v1930_v24 = vld [vmem:[%s2452_s1 + $0x434] ss:$8 sps:$4 sm:$0xff]  }
  0x5f   : > { %1317 = vmatprep.subr.bf16.mxu1 %v1837_v25  ;;  %v1950_v25 = vmov 0  }
  0x61   : > { %1265 = vmatpush1.bf16.msra.mxu0 %v1832_v30  ;;  %v1934_v30 = vld [vmem:[%s2452_s1 + $0x410] ss:$8 sps:$4 sm:$0xff]  }
  0x62   : > { %1318 = vmatpush1.bf16.msra.mxu1 %v1835_v31  ;;  %1266 = vmatprep.subr.bf16.mxu0 %v1840_v32  ;;  %v1939_v31 = vld [vmem:[%s2452_s1 + $0x404] ss:$8 sps:$4 sm:$0xff]   ;;  %v1937_v32 = vld [vmem:[%s2452_s1 + $0x400] ss:$8 sps:$4 sm:$0xff]  }
  0x63   : > { %1319 = vmatprep.subr.bf16.mxu1 %v1843_v33  ;;  %v1940_v33 = vld [vmem:[%s2124_s5 + $0x20] ss:$36 sps:$4 sm:$0xff]  }
  0x65   : > { %1267 = vmatpush1.bf16.msra.mxu0 %v1838_v34  ;;  %v1941_v34 = vld [vmem:[%s2124_s5 + $0x68] ss:$36 sps:$4 sm:$0xff]  }
  0x66   : > { %1320 = vmatpush1.bf16.msra.mxu1 %v1841_v35  ;;  %1268 = vmatprep.subr.bf16.mxu0 %v1846_v36 }
  0x67   : > { %1321 = vmatprep.subr.bf16.mxu1 %v1849_v37 }
  0x69   : > { %1269 = vmatpush1.bf16.msra.mxu0 %v1844_v38 }
  0x6a   : > { %1322 = vmatpush1.bf16.msra.mxu1 %v1847_v39  ;;  %1270 = vmatprep.subr.bf16.mxu0 %v1852_v40 }
  0x6b   : > { %1323 = vmatprep.subr.bf16.mxu1 %v1855_v42 }
  0x6d   : > { %1271 = vmatpush2.bf16.msra.mxu0 %v1850_v44 }
  0x6e   : > { %1324 = vmatpush2.bf16.msra.mxu1 %v1853_v45  ;;  %1272 = vmatprep.subr.bf16.mxu0 %v1858_v46 }
  0x6f   : > { %1325 = vmatprep.subr.bf16.mxu1 %v1861_v47 }
  0x71   : > { %1273 = vmatpush2.bf16.msra.mxu0 %v1856_v48 }
  0x72   : > { %1326 = vmatpush2.bf16.msra.mxu1 %v1859_v49  ;;  %1274 = vmatprep.subr.bf16.mxu0 %v1864_v50 }
  0x73   : > { %1327 = vmatprep.subr.bf16.mxu1 %v1867_v51 }
  0x75   : > { %1275 = vmatpush2.bf16.msra.mxu0 %v1862_v52 }
  0x76   : > { %1328 = vmatpush2.bf16.msra.mxu1 %v1865_v53  ;;  %1276 = vmatprep.subr.bf16.mxu0 %v1870_v54 }
  0x77   : > { %1329 = vmatprep.subr.bf16.mxu1 %v1873_v55 }
  0x79   : > { %1277 = vmatpush2.bf16.msra.mxu0 %v1868_v56 }
  0x7a   : > { %1330 = vmatpush2.bf16.msra.mxu1 %v1871_v57  ;;  %1278 = vmatprep.subr.bf16.mxu0 %v1876_v58 }
  0x7b   : > { %1331 = vmatprep.subr.bf16.mxu1 %v1879_v59 }
  0x7d   : > { %1279 = vmatpush2.bf16.msra.mxu0 %v1874_v60 }
  0x7e   : > { %1332 = vmatpush2.bf16.msra.mxu1 %v1877_v61  ;;  %1280 = vmatprep.subr.bf16.mxu0 %v1888_v62 }
  0x7f   : > { %1333 = vmatprep.subr.bf16.mxu1 %v1891_v63  ;;  %v1421_v63 = vlaneseq }
  0x81   : > { %1281 = vmatpush2.bf16.msra.mxu0 %v1886_v0 }
  0x82   : > { %1334 = vmatpush2.bf16.msra.mxu1 %v1889_v1  ;;  %1282 = vmatprep.subr.bf16.mxu0 %v1894_v2  ;;  %v1422_v2 = vshrl.u32 %v1421_v63, 7 }
  0x83   : > { %1335 = vmatprep.subr.bf16.mxu1 %v1897_v3 }
  0x85   : > { %1283 = vmatpush2.bf16.msra.mxu0 %v1892_v4 }
  0x86   : > { %1336 = vmatpush2.bf16.msra.mxu1 %v1895_v5  ;;  %1284 = vmatprep.subr.bf16.mxu0 %v1900_v6 }
  0x87   : > { %1337 = vmatprep.subr.bf16.mxu1 %v1903_v7 }
  0x89   : > { %1285 = vmatpush2.bf16.msra.mxu0 %v1898_v8 }
  0x8a   : > { %1338 = vmatpush2.bf16.msra.mxu1 %v1901_v9  ;;  %1360 = vmatprep.subr.bf16.mxu0 %v1912_v10 }
  0x8b   : > { %1674 = vmatprep.subr.bf16.mxu1 %v1912_v10 }
  0x8c   : > { %1287 = vmatmul.mubr.bf16.vlgmr.msra.gmra.mxu0 %v1904_v11 }
  0x8d   : > { %1340 = vmatmul.mubr.bf16.vlgmr.msra.gmra.mxu1 %v1907_v12  ;;  %1361 = vmatpush1.bf16.msra.mxu0 %v1910_v13 }
  0x8e   : > { %1682 = vmatpush1.bf16.msra.mxu1 %v1910_v13  ;;  %1362 = vmatprep.subr.bf16.mxu0 %v1915_v14 }
  0x8f   : > { %1675 = vmatprep.subr.bf16.mxu1 %v1915_v14  ;;  %1296 = vmatprep.mubr.bf16.mxu0 %v1916_v15 }
  0x90   : > { %1349 = vmatprep.mubr.bf16.mxu1 %v1922_v16 }
  0x91   : > { %1363 = vmatpush1.bf16.msra.mxu0 %v1913_v17 }
  0x92   : > { %1683 = vmatpush1.bf16.msra.mxu1 %v1913_v17  ;;  %1364 = vmatprep.subr.bf16.mxu0 %v1921_v18 }
  0x93   : > { %1676 = vmatprep.subr.bf16.mxu1 %v1921_v18 }
  0x94   : > { %1297 = vmatmul.mubr.bf16.gmra.mxu0 %v1918_v19 }
  0x95   : > { %1350 = vmatmul.mubr.bf16.gmra.mxu1 %v1924_v20  ;;  %1365 = vmatpush1.bf16.msra.mxu0 %v1919_v21 }
  0x96   : > { %1684 = vmatpush1.bf16.msra.mxu1 %v1919_v21  ;;  %1366 = vmatprep.subr.bf16.mxu0 %v1927_v22 }
  0x97   : > { %1677 = vmatprep.subr.bf16.mxu1 %v1927_v22  ;;  %1392 = vmatprep.mubr.bf16.mxu0 %v1950_v25 }
  0x98   : > { %1402 = vmatprep.mubr.bf16.mxu1 %v1950_v25  ;;  %v1423_v25 = vsub.s32 0, %v1422_v2 }
  0x99   : > { %1367 = vmatpush1.bf16.msra.mxu0 %v1925_v23 }
  0x9a   : > { %1685 = vmatpush1.bf16.msra.mxu1 %v1925_v23  ;;  %1368 = vmatprep.subr.bf16.mxu0 %v1930_v24 }
  0x9b   : > { %1678 = vmatprep.subr.bf16.mxu1 %v1930_v24 }
  0x9d   : > { %1369 = vmatpush1.bf16.msra.mxu0 %v1928_v26 }
  0x9e   : > { %1686 = vmatpush1.bf16.msra.mxu1 %v1928_v26  ;;  %1370 = vmatprep.subr.bf16.mxu0 %v1933_v27  ;;  %v1427_v26 = vsub.s32 1, %v1422_v2 }
  0x9f   : > { %1679 = vmatprep.subr.bf16.mxu1 %v1933_v27 }
  0xa1   : > { %1371 = vmatpush1.bf16.msra.mxu0 %v1931_v28 }
  0xa2   : > { %1687 = vmatpush1.bf16.msra.mxu1 %v1931_v28  ;;  %1372 = vmatprep.subr.bf16.mxu0 %v1936_v29 }
  0xa3   : > { %1680 = vmatprep.subr.bf16.mxu1 %v1936_v29 }
  0xa5   : > { %1373 = vmatpush1.bf16.msra.mxu0 %v1934_v30 }
  0xa6   : > { %1688 = vmatpush1.bf16.msra.mxu1 %v1934_v30  ;;  %1374 = vmatprep.subr.bf16.mxu0 %v1939_v31 }
  0xa7   : > { %1681 = vmatprep.subr.bf16.mxu1 %v1939_v31  ;;  %v1419_v31 = vld [vmem:[%s2453_s2] sm:$0x3] }
  0xa9   : > { %1375 = vmatpush1.bf16.msra.mxu0 %v1937_v32 }
  0xaa   : > { %1689 = vmatpush1.bf16.msra.mxu1 %v1937_v32 }
  0xac   : > { %1393 = vmatmul.mubr.bf16.vlgmr.msra.gmra.mxu0 %v1940_v33 }
  0xad   : > { %1403 = vmatmul.mubr.bf16.vlgmr.msra.gmra.mxu1 %v1941_v34 }
 0x10c   : > { %v1182_v35 = vpop.f32.mrf.mxu0 }
 0x10d   : > { %v1235_v36 = vpop.f32.mrf.mxu1 }
 0x10e   : > { %v1184_v37 = vpop.f32.mrf.mxu0  ;;  %v1236_v3 = vadd.f32 %v1235_v36, %v1182_v35 }
 0x10f   : > { %v1237_v38 = vpop.f32.mrf.mxu1 }
 0x110   : > { %v1186_v39 = vpop.f32.mrf.mxu0  ;;  %v1238_v8 = vadd.f32 %v1237_v38, %v1184_v37 }
 0x111   : > { %v1239_v40 = vpop.f32.mrf.mxu1 }
 0x112   : > { %v1188_v41 = vpop.f32.mrf.mxu0  ;;  %v1240_v4 = vadd.f32 %v1239_v40, %v1186_v39 }
 0x113   : > { %v1241_v43 = vpop.f32.mrf.mxu1 }
 0x114   : > { %v1192_v42 = vpop.f32.mrf.mxu0  ;;  %v1242_v9 = vadd.f32 %v1241_v43, %v1188_v41 }
 0x115   : > { %v1245_v44 = vpop.f32.mrf.mxu1 }
 0x116   : > { %v1194_v45 = vpop.f32.mrf.mxu0  ;;  %v1246_v5 = vadd.f32 %v1245_v44, %v1192_v42  ;;  %v1424_v44 = vrot.slane %v1419_v31, %v1423_v25 }
 0x117   : > { %v1247_v46 = vpop.f32.mrf.mxu1 }
 0x118   : > { %v1196_v47 = vpop.f32.mrf.mxu0  ;;  %v1248_v10 = vadd.f32 %v1247_v46, %v1194_v45 }
 0x119   : > { %v1249_v48 = vpop.f32.mrf.mxu1 }
 0x11a   : > { %v1198_v49 = vpop.f32.mrf.mxu0  ;;  %v1250_v6 = vadd.f32 %v1249_v48, %v1196_v47 }
 0x11b   : > { %v1251_v51 = vpop.f32.mrf.mxu1 }
 0x11c   : > { %v1252_v11 = vadd.f32 %v1251_v51, %v1198_v49 }
 0x14c   : > { %v1288_v50 = vpop.f32.mrf.mxu0 }
 0x14d   : > { %v1341_v52 = vpop.f32.mrf.mxu1  ;;  %v1289_v13 = vadd.f32 %v1288_v50, %v1236_v3 }
 0x14e   : > { %v1290_v53 = vpop.f32.mrf.mxu0 }
 0x14f   : > { %v1343_v54 = vpop.f32.mrf.mxu1  ;;  %v1291_v17 = vadd.f32 %v1290_v53, %v1238_v8  ;;  %v1342_v27 = vadd.f32 %v1341_v52, %v1289_v13 }
 0x150   : > { %v1292_v55 = vpop.f32.mrf.mxu0 }
 0x151   : > { %v1345_v56 = vpop.f32.mrf.mxu1  ;;  %v1293_v14 = vadd.f32 %v1292_v55, %v1240_v4  ;;  %v1344_v32 = vadd.f32 %v1343_v54, %v1291_v17  ;;  %v1428_v54 = vrot.slane %v1419_v31, %v1427_v26 }
 0x152   : > { %v1294_v57 = vpop.f32.mrf.mxu0 }
 0x153   : > { %v1347_v58 = vpop.f32.mrf.mxu1  ;;  %v1295_v18 = vadd.f32 %v1294_v57, %v1242_v9  ;;  %v1346_v28 = vadd.f32 %v1345_v56, %v1293_v14 }
 0x154   : > { %v1298_v59 = vpop.f32.mrf.mxu0 }
 0x155   : > { %v1351_v60 = vpop.f32.mrf.mxu1  ;;  %v1299_v15 = vadd.f32 %v1298_v59, %v1246_v5  ;;  %v1348_v33 = vadd.f32 %v1347_v58, %v1295_v18 }
 0x156   : > { %v1300_v61 = vpop.f32.mrf.mxu0 }
 0x157   : > { %v1353_v62 = vpop.f32.mrf.mxu1  ;;  %v1301_v19 = vadd.f32 %v1300_v61, %v1248_v10  ;;  %v1352_v29 = vadd.f32 %v1351_v60, %v1299_v15 }
 0x158   : > { %v1302_v0 = vpop.f32.mrf.mxu0 }
 0x159   : > { %v1355_v1 = vpop.f32.mrf.mxu1  ;;  %v1303_v16 = vadd.f32 %v1302_v0, %v1250_v6  ;;  %v1354_v34 = vadd.f32 %v1353_v62, %v1301_v19 }
 0x15a   : > { %v1304_v7 = vpop.f32.mrf.mxu0 }
 0x15b   : > { %v1357_v12 = vpop.f32.mrf.mxu1  ;;  %v1305_v20 = vadd.f32 %v1304_v7, %v1252_v11  ;;  %v1356_v30 = vadd.f32 %v1355_v1, %v1303_v16 }
 0x15d   : > { %v1358_v35 = vadd.f32 %v1357_v12, %v1305_v20 }
 0x16c   : > { %v1394_v21 = vpop.f32.mrf.mxu0 }
 0x16d   : > { %v1404_v22 = vpop.f32.mrf.mxu1  ;;  %v1395_v38 = vadd.f32 %v1394_v21, %v1342_v27 }
 0x16e   : > { %v1396_v23 = vpop.f32.mrf.mxu0  ;;  %v1405_v39 = vadd.f32 %v1404_v22, %v1352_v29 }
 0x16f   : > { %v1406_v24 = vpop.f32.mrf.mxu1  ;;  %v1397_v42 = vadd.f32 %v1396_v23, %v1344_v32 }
 0x170   : > { %v1398_v36 = vpop.f32.mrf.mxu0  ;;  %v1407_v43 = vadd.f32 %v1406_v24, %v1354_v34 }
 0x171   : > { %v1408_v37 = vpop.f32.mrf.mxu1  ;;  %v1399_v40 = vadd.f32 %v1398_v36, %v1346_v28 }
 0x172   : > { %v1409_v41 = vadd.f32 %v1408_v37, %v1356_v30  ;;  %v1400_v45 = vpop.f32.mrf.mxu0 }
 0x173   : > { %v1410_v46 = vpop.f32.mrf.mxu1  ;;  %v1413_v47 = vmax.f32 %v1395_v38, %v1399_v40  ;;  %v1401_v49 = vadd.f32 %v1400_v45, %v1348_v33 }
 0x174   : > { %v1415_v48 = vmax.f32 %v1405_v39, %v1409_v41  ;;  %v1411_v50 = vadd.f32 %v1410_v46, %v1358_v35 }
 0x175   : > { %v1414_v52 = vmax.f32 %v1397_v42, %v1401_v49 }
 0x176   : > { %v1417_v51 = vmax.f32 %v1413_v47, %v1415_v48  ;;  %v1416_v53 = vmax.f32 %v1407_v43, %v1411_v50 }
 0x178   : > { %v1431_v55 = vadd.f32 %v1424_v44, %v1417_v51  ;;  %v1418_v56 = vmax.f32 %v1414_v52, %v1416_v53 }
 0x17a   : > { %v1432_v57 = vadd.f32 %v1428_v54, %v1418_v56  ;;  %v1433_v58 = vmax.f32 %v1431_v55, 0.0 }
 0x17c   : > { %v1434_v59 = vmax.f32 %v1432_v57, 0.0 }
 0x17e   : > { %v1673_v60 = vpack.c.bf16 %v1434_v59, %v1433_v58 }
 0x180   : > { %1443 = vst [vmem:[%s170_s18] sm:$0xff] %v1673_v60 }
 0x181 PF: > { %s13_s12 = sadd.s32 1, %s1948_s12  }
 0x182   : > { %p10_p4 = scmp.ge.s32.totalorder %s13_s12, 4  }
 0x184   :  { %12 = sbr.rel (!%p10_p4) target bundleno = 1 (0x1), region = 62 }

// kernel: cnn_min_forward.7
= control target key start
LH: loop header
LB: loop body
LE: loop exit
PB: predicated region body
PF: predicated region fallthrough
CT: control target
= control target key end

     0   :  { %v525_v2 = vmov 0.0   ;;  %v80_v10 = vlaneseq  ;;  %v526_v15 = vmov 1966171168   ;;  %s658_s0 = inlined_call_operand.vmem [shape: bf16[2,256], index: 0, kind: input, shape index: {}]   ;;  %s659_s1 = inlined_call_operand.vmem [shape: bf16[256,64], index: 1, kind: input, shape index: {}]   ;;  %s660_s2 = inlined_call_operand.vmem [shape: f32[1,64], index: 2, kind: input, shape index: {}]   ;;  %s661_s3 = inlined_call_operand.vmem [shape: bf16[64,32], index: 3, kind: input, shape index: {}]   ;;  %s662_s4 = inlined_call_operand.vmem [shape: f32[1,32], index: 4, kind: input, shape index: {}]   ;;  %s663_s5 = inlined_call_operand.vmem [shape: bf16[32,5], index: 5, kind: input, shape index: {}]   ;;  %s664_s6 = inlined_call_operand.vmem [shape: f32[1,5], index: 6, kind: input, shape index: {}]   ;;  %s665_s7 = inlined_call_operand.hbm [shape: f32[2,5], index: 7, kind: output, shape index: {}]  }
   0x1   :  { %v481_v0 = vld [vmem:[%s659_s1 + $0x78] sm:$0xff]   ;;  %457 = vmatprep.subr.bf16.mxu1 %v525_v2  ;;  %v483_v3 = vld [vmem:[%s659_s1 + $0x70] sm:$0xff]   ;;  %v485_v5 = vld [vmem:[%s659_s1 + $0x68] sm:$0xff]   ;;  %v78_v16 = vunpack.c.l.s4 %v526_v15 }
   0x2   :  { %v482_v1 = vld [vmem:[%s659_s1 + $0x38] sm:$0xff]   ;;  %427 = vmatprep.subr.bf16.mxu0 %v481_v0  ;;  %v484_v4 = vld [vmem:[%s659_s1 + $0x30] sm:$0xff]   ;;  %v486_v6 = vld [vmem:[%s659_s1 + $0x28] sm:$0xff]   ;;  %v81_v17 = vshrl.u32 %v80_v10, 7 }
   0x3   :  { %428 = vmatpush3.bf16.msra.mxu0 %v482_v1  ;;  %v487_v7 = vld [vmem:[%s659_s1 + $0x60] sm:$0xff]   ;;  %v489_v9 = vld [vmem:[%s659_s1 + $0x58] sm:$0xff]   ;;  %v491_v12 = vld [vmem:[%s659_s1 + $0x50] sm:$0xff]   ;;  %v79_v21 = vunpack.c.0.s8 %v78_v16 }
   0x4   :  { %429 = vmatprep.subr.bf16.mxu0 %v483_v3  ;;  %v488_v8 = vld [vmem:[%s659_s1 + $0x20] sm:$0xff]   ;;  %v490_v11 = vld [vmem:[%s659_s1 + $0x18] sm:$0xff]   ;;  %v492_v14 = vld [vmem:[%s659_s1 + $0x10] sm:$0xff]  }
   0x5   :  { %v400_v13 = vld.sshfl [vmem:[%s658_s0] sm:$0x11 pattern:$0x75316420]  ;;  %v497_v18 = vld [vmem:[%s661_s3 + $0x18] sm:$0xff]   ;;  %v493_v19 = vld [vmem:[%s659_s1 + $0x48] sm:$0xff]   ;;  %v82_v22 = vsub.s32 %v79_v21, %v81_v17 }
   0x6   :  { %v76_v20 = vcombine.high %v400_v13, %v400_v13  ;;  %458 = vmatpush3.bf16.msra.mxu1 %v497_v18 }
   0x7   :  { %430 = vmatpush3.bf16.msra.mxu0 %v484_v4  ;;  %459 = vmatprep.subr.bf16.mxu1 %v525_v2 }
   0x8   :  { %431 = vmatprep.subr.bf16.mxu0 %v485_v5 }
   0xb   :  { %432 = vmatpush3.bf16.msra.mxu0 %v486_v6 }
   0xc   :  { %433 = vmatprep.subr.bf16.mxu0 %v487_v7 }
   0xf   :  { %434 = vmatpush3.bf16.msra.mxu0 %v488_v8 }
  0x10   :  { %435 = vmatprep.subr.bf16.mxu0 %v489_v9 }
  0x13   :  { %436 = vmatpush3.bf16.msra.mxu0 %v490_v11 }
  0x14   :  { %437 = vmatprep.subr.bf16.mxu0 %v491_v12 }
  0x15   :  { %12 = vsyncpa [#allocation3], 0  ;;  %v494_v23 = vld [vmem:[%s659_s1 + $0x8] sm:$0xff]   ;;  %v90_v24 = vrot.slane %v76_v20, %v82_v22  ;;  %v495_v25 = vld [vmem:[%s659_s1 + $0x40] sm:$0xff]   ;;  %v83_v27 = vrot.slane %v400_v13, %v82_v22  ;;  %vm527_vm0 = vmmov 0   ;;  %vm270_vm1 = vcmask 523264  }
  0x16   :  { %v496_v26 = vld [vmem:[%s659_s1] sm:$0xff]   ;;  %v498_v28 = vld [vmem:[%s661_s3 + $0x10] sm:$0xff]   ;;  %v499_v29 = vld [vmem:[%s661_s3 + $0x8] sm:$0xff]   ;;  %465 = vmatprep.mubr.msk.bf16.mxu1 %vm527_vm0, %v525_v2  ;;  %vm339_vm2 = vcmask 261120   ;;  %s528_s26 = smov [#allocation2]   ;;  %vm383_vm3 = vcmask 33792  }
  0x17   :  { %438 = vmatpush3.bf16.msra.mxu0 %v492_v14  ;;  %221 = vmatprep.mubr.bf16.mxu0 %v90_v24  ;;  %v500_v30 = vld [vmem:[%s661_s3] sm:$0xff]   ;;  %v501_v39 = vld [vmem:[%s663_s5 + $0x8] sm:$0xff]  }
  0x18   :  { %439 = vmatprep.subr.bf16.mxu0 %v493_v19  ;;  %460 = vmatpush3.bf16.msra.mxu1 %v498_v28  ;;  %v399_v32 = vld [vmem:[%s660_s2] ss:$0 sm:$0xff] }
  0x19   :  { %461 = vmatprep.subr.bf16.mxu1 %v525_v2  ;;  %v502_v41 = vld [vmem:[%s663_s5] sm:$0xff]   ;;  %s391_s5 = sshll.u32 %s528_s26, 4  ;;  %s392_s5 = int_to_ptr.vmem [resolvable:$true] %s391_s5 }
  0x1a   :  { %v417_v42 = vld [vmem:[%s662_s4] ss:$0 sm:$0xff]  ;;  %s503_s4 = scalar_lea.vmem %s392_s5, 32  ;;  %p508_p1 = scmp.lt.s32.totalorder %s392_s5, %s392_s5 }
  0x1b   :  { %440 = vmatpush3.bf16.msra.mxu0 %v494_v23  ;;  %v423_v50 = vld [vmem:[%s664_s6] ss:$0 sm:$0xff]  ;;  %p504_p0 = scmp.ne.s32.totalorder %s392_s5, %s503_s4  ;;  %p509_p2 = scmp.lt.s32.totalorder %s503_s4, %s503_s4 }
  0x1c   :  { %441 = vmatprep.subr.bf16.mxu0 %v495_v25  ;;  %462 = vmatpush3.bf16.msra.mxu1 %v499_v29 }
  0x1d   :  { %463 = vmatprep.subr.bf16.mxu1 %v525_v2  ;;  %p510_p3 = por %p509_p2, %p508_p1 }
  0x1f   :  { %442 = vmatpush3.bf16.msra.mxu0 %v496_v26  ;;  %p511_p4 = pnand %p510_p3, %p504_p0 }
  0x20   :  { %464 = vmatpush3.bf16.msra.mxu1 %v500_v30 }
  0x21   :  { %469 = vmatprep.subr.bf16.mxu1 %v525_v2 }
  0x22   :  { %222 = vmatmul.mubr.bf16.vlgmr.msra.gmra.mxu0 %v83_v27 }
  0xe2   :  { %v443_v31 = vpop.f32.mrf.mxu0 }
  0xe4   :  { %v444_v33 = vpop.f32.mrf.mxu0 }
  0xe5   :  { %v445_v34 = vadd.f32 %v444_v33, %v443_v31 }
  0xe6   :  { %v446_v35 = vpop.f32.mrf.mxu0 }
  0xe7   :  { %v224_v36 = vadd.f32 %v445_v34, %v399_v32 }
  0xe8   :  { %v447_v37 = vpop.f32.mrf.mxu0 }
  0xe9   :  { %v229_v38 = vmax.f32 %v224_v36, 0.0 }
  0xeb   :  { %v230_v40 = vpack.c.bf16 %v229_v38, %v229_v38 }
  0xed   :  { %466 = vmatmul.mubr.msk.bf16.vlgmr.msra.gmra.mxu1 %vm270_vm1, %v230_v40 }
  0xee   :  { %470 = vmatpush3.bf16.msra.mxu1 %v501_v39  ;;  %473 = vmatprep.mubr.msk.bf16.mxu1 %vm527_vm0, %v525_v2 }
  0xef   :  { %471 = vmatprep.subr.bf16.mxu1 %v525_v2 }
  0xf2   :  { %472 = vmatpush3.bf16.msra.mxu1 %v502_v41 }
 0x1ad   :  { %v308_v43 = vpop.f32.mrf.mxu1 }
 0x1ae   :  { %v309_v44 = vadd.f32 %v417_v42, %v308_v43 }
 0x1af   :  { %v467_v45 = vpop.f32.mrf.mxu1 }
 0x1b0   :  { %v314_v46 = vmax.f32 %v309_v44, 0.0 }
 0x1b1   :  { %v311_v47 = vpop.f32.mrf.mxu1 }
 0x1b2   :  { %v315_v48 = vpack.c.bf16 %v314_v46, %v314_v46 }
 0x1b3   :  { %v468_v49 = vpop.f32.mrf.mxu1 }
 0x1b4   :  { %474 = vmatmul.mubr.msk.bf16.vlgmr.msra.gmra.mxu1 %vm339_vm2, %v315_v48 }
 0x274   :  { %v377_v51 = vpop.f32.mrf.mxu1 }
 0x275   :  { %v378_v52 = vadd.f32 %v423_v50, %v377_v51 }
 0x276   :  { %v475_v53 = vpop.f32.mrf.mxu1 }
 0x277   :  { %384 = vst.msk [vmem:[#allocation2] sm:$0x3] %vm383_vm3, %v378_v52 }
 0x278   :  { %v380_v54 = vpop.f32.mrf.mxu1 }
 0x279   :  { %514 = shalt.err (!%p511_p4)
}
 0x27a   :  { %394 = dma.vmem_to_hbm [thread:$0]  %s392_s5, 32, %s665_s7, [#allocation3]   ;;  %v476_v55 = vpop.f32.mrf.mxu1 }
 0x27b   :  { %523 = dma.done.wait [#allocation3], 32  }
 0x27c   :  { %524 = vsyncadd [#allocation3], 4294967264 }
 0x27d   :  { %398 = vsyncpa [#allocation3], 1 }

</bundles_post_ra>
